<compile_context>
chip_gen: v7x
topology: tpu7x:2x2x1
jax: 0.10.0
libtpu: 0.0.40
codegen_flags: <defaults>
</compile_context>

<pallas_src>
import math

import jax
import jax.numpy as jnp
from jax import lax
from jax.experimental import pallas as pl
from jax.experimental.pallas import tpu as pltpu  # noqa: F401  (defaults suffice here)

# Synthetic, deterministic RBF-kernel hyper-parameters (the PyTorch module receives a
# `kernel` object; we fix an RBF kernel K(x, x') = var * exp(-0.5 ||x-x'||^2 / l^2)).
VARIANCE = 1.0
LENGTHSCALE = 0.5
JITTER = 1e-4  # diagonal jitter on same-input kernel matrices for f32 inverses (glue)


# ---------------------------------------------------------------------------
# In-kernel helpers (operate on traced VMEM values; no pallas_call of their own)
# ---------------------------------------------------------------------------
def _sum_all(x):
    """Full reduction of a 2-D tile to a (1, 1) value (lane reduce, then sublane)."""
    return jnp.sum(jnp.sum(x, axis=-1, keepdims=True), axis=-2, keepdims=True)


def _rbf(x1, x2, same=False, jitter=0.0):
    """RBF kernel matrix K[i, j] = var * exp(-0.5 ||x1_i - x2_j||^2 / l^2).

    For the same-input case the squared norms are read off the diagonal of the
    cross Gram matrix (no extra matmul / ones trick), and the diagonal jitter is
    fused in here instead of a separate `+ jitter * eye` pass in the wrapper.
    """
    cross = lax.dot_general(x1, x2, (((1,), (1,)), ((), ())),
                            preferred_element_type=jnp.float32)            # (N1, N2)
    if same or jitter:
        n = cross.shape[0]
        rows = lax.broadcasted_iota(jnp.int32, (n, n), 0)
        cols = lax.broadcasted_iota(jnp.int32, (n, n), 1)
        diag_mask = rows == cols
    if same:
        diag = jnp.where(diag_mask, cross, 0.0)          # ||x_i||^2 on the diagonal
        sq1 = jnp.sum(diag, axis=-1, keepdims=True)      # (N, 1)
        sq2 = jnp.sum(diag, axis=-2, keepdims=True)      # (1, N)
    else:
        sq1 = jnp.sum(x1 * x1, axis=-1, keepdims=True)                     # (N1, 1)
        sq2 = lax.dot_general(jnp.ones_like(x1), x2 * x2,
                              (((1,), (1,)), ((), ())),
                              preferred_element_type=jnp.float32)          # (N1, N2)
    sqd = jnp.maximum(sq1 + sq2 - 2.0 * cross, 0.0)
    out = VARIANCE * jnp.exp(-0.5 * sqd / (LENGTHSCALE ** 2))
    if jitter:
        out = jnp.where(diag_mask, out + jitter, out)
    return out


def _tril_sq(L):
    """S = tril(L) @ tril(L)^T."""
    m = L.shape[0]
    rows = lax.broadcasted_iota(jnp.int32, (m, m), 0)
    cols = lax.broadcasted_iota(jnp.int32, (m, m), 1)
    Lt = jnp.where(rows >= cols, L, 0.0)
    return lax.dot_general(Lt, Lt, (((1,), (1,)), ((), ())),
                           preferred_element_type=jnp.float32)


def _sweep_inverse_many(mats):
    """Inverse + logdet of several SPD matrices via the symmetric sweep operator.

    All matrices with the same size n share ONE fori_loop of n iterations (the pivot
    masks are built once per iteration and reused for every matrix).  After sweeping
    every pivot the matrix equals -A^{-1}; the pivots are the LDL^T pivots, so
    logdet(A) = sum_k log(pivot_k).  Returns [(A^{-1}, logdet(1,1)), ...] in input
    order.  This replaces jnp.linalg.solve / inv / slogdet round trips through HBM.
    """
    groups = {}
    for idx, A in enumerate(mats):
        groups.setdefault(A.shape[-1], []).append((idx, A))

    results = [None] * len(mats)
    for n, items in groups.items():
        rows = lax.broadcasted_iota(jnp.int32, (n, n), 0)
        cols = lax.broadcasted_iota(jnp.int32, (n, n), 1)

        def body(k, carry, rows=rows, cols=cols):
            rm = rows == k
            cm = cols == k
            pm = rm & cm
            new = []
            for B, ld in carry:
                d = _sum_all(jnp.where(pm, B, 0.0))                           # (1, 1)
                col = jnp.sum(jnp.where(cm, B, 0.0), axis=-1, keepdims=True)  # (n, 1)
                row = jnp.sum(jnp.where(rm, B, 0.0), axis=-2, keepdims=True)  # (1, n)
                inv_d = 1.0 / d
                B = B - (col * inv_d) * row
                B = jnp.where(cm, col * inv_d, B)
                B = jnp.where(rm, row * inv_d, B)
                B = jnp.where(pm, -inv_d, B)
                new.append((B, ld + jnp.log(d)))
            return tuple(new)

        init = tuple((A, jnp.zeros((1, 1), jnp.float32)) for _, A in items)
        swept = lax.fori_loop(0, n, body, init)
        for (idx, _), (B, ld) in zip(items, swept):
            results[idx] = (-B, ld)
    return results


# ---------------------------------------------------------------------------
# Fused EnsembleGP.forward() kernel: one pallas_call -> scalar -ELBO
# ---------------------------------------------------------------------------
def _ensemble_gp_kernel(z_ref, qm_ref, qL_ref, zk_ref, qmk_ref, qLk_ref, logz_ref,
                        out_ref):
    f32 = jnp.float32
    z = z_ref[...]
    qm = qm_ref[...]
    K = zk_ref.shape[0]
    M = z_ref.shape[0]
    Mk = zk_ref.shape[1]

    # ------------------------------ shared quantities ------------------------------
    Kuu = _rbf(z, z, same=True, jitter=JITTER)         # kernel.K(z, z)
    qS = _tril_sq(qL_ref[...])                         # tril(q_L) tril(q_L)^T

    # --------------------- per-model matrices (K tiny -> unrolled) -----------------
    Kkk, Kku, Sk = [], [], []
    for k in range(K):
        zk = zk_ref[k]
        Kkk.append(_rbf(zk, zk, same=True, jitter=JITTER))   # kernel.K(z_k, z_k)
        Kku.append(_rbf(zk, z))                              # K(z, z_k)^T (RBF symm.)
        Sk.append(_tril_sq(qLk_ref[k]))                      # sub-model covariance S_k

    # ------ every SPD inverse + logdet, all sharing the in-kernel sweep loop -------
    inv_ld = _sweep_inverse_many([Kuu, qS] + Kkk + Sk)
    iKuu, ld_Kuu = inv_ld[0]
    iqS, ld_qS = inv_ld[1]
    iKkk = inv_ld[2:2 + K]
    iSk = inv_ld[2 + K:2 + 2 * K]

    log2pi_Mk = float(Mk) * math.log(2.0 * math.pi)
    dS = qS - Kuu

    # -------------------------------- expectation() --------------------------------
    E = jnp.zeros((1, 1), f32)
    for k in range(K):
        A = jnp.dot(Kku[k], iKuu, preferred_element_type=f32)          # (Mk, M)
        m_e = jnp.dot(A, qm, preferred_element_type=f32)               # (Mk, 1)
        mid = jnp.dot(A, dS, preferred_element_type=f32)               # (Mk, M)
        # iKuu is symmetric => AT (= iKuu @ Kuk) == A^T, so S_e = Kkk + mid @ A^T
        # (one fewer MXU matmul per model than forming AT explicitly).
        S_e = Kkk[k] + lax.dot_general(mid, A, (((1,), (1,)), ((), ())),
                                       preferred_element_type=f32)     # (Mk, Mk)

        iSk_k, ld_Sk = iSk[k]
        iKkk_k, ld_Kkk = iKkk[k]
        d = m_e - qmk_ref[k]
        # trace(X @ S_e) == sum(X * S_e) because both X and S_e are symmetric here.
        trq = _sum_all(iSk_k * S_e)
        trp = _sum_all(iKkk_k * S_e)
        quadq = _sum_all(d * jnp.dot(iSk_k, d, preferred_element_type=f32))
        quadp = _sum_all(m_e * jnp.dot(iKkk_k, m_e, preferred_element_type=f32))

        E_log_q = -trq - quadq - (log2pi_Mk + ld_Sk)
        E_log_p = -trp - quadp - (log2pi_Mk + ld_Kkk)
        E = E + 0.5 * (E_log_q - E_log_p)
    E = E + logz_ref[...]                              # + sum_k logZ_k

    # ---- KL term: divergence(q_u, p_u) == kl_divergence(p_u, q_u) = KL(p_u || q_u)
    #      = 0.5 * [tr(qS^-1 Kuu) + q_m^T qS^-1 q_m - M + logdet(qS) - logdet(Kuu)]
    kl_tr = _sum_all(iqS * Kuu)
    kl_quad = _sum_all(qm * jnp.dot(iqS, qm, preferred_element_type=f32))
    kl = 0.5 * (kl_tr + kl_quad - float(M) + ld_qS - ld_Kuu)

    out_ref[...] = kl - E                              # -ELBO = -(E - kl)


# ---------------------------------------------------------------------------
# Wrappers
# ---------------------------------------------------------------------------
def pack_models(models):
    """Stack the per-sub-model parameters along a leading model axis (done once)."""
    f32 = jnp.float32
    zk_all = jnp.stack([jnp.asarray(m["z"], f32) for m in models])
    qmk_all = jnp.stack([jnp.asarray(m["q_m"], f32) for m in models])
    qLk_all = jnp.stack([jnp.asarray(m["q_L"], f32) for m in models])
    logz_sum = jnp.full((1, 1), sum(float(m["logZ"]) for m in models), f32)
    return zk_all, qmk_all, qLk_all, logz_sum


@jax.jit
def ensemble_gp_forward(z, q_m, q_L, zk_all, qmk_all, qLk_all, logz_sum):
    """EnsembleGP.forward() -> scalar -ELBO, as a single fused Pallas kernel."""
    f32 = jnp.float32
    out = pl.pallas_call(
        _ensemble_gp_kernel,
        out_shape=jax.ShapeDtypeStruct((1, 1), f32),
    )(z.astype(f32), q_m.astype(f32), q_L.astype(f32),
      zk_all.astype(f32), qmk_all.astype(f32), qLk_all.astype(f32),
      logz_sum.astype(f32))
    return out[0, 0]


# ---------------------------------------------------------------------------
if __name__ == "__main__":
    key = jax.random.PRNGKey(0)
    M = 16            # ensemble inducing points
    D = 2             # input_dim (> 1 branch of __init__)
    NUM_MODELS = 2
    Mk = 16           # per-sub-model inducing points

    k_z, k_qm, *model_keys = jax.random.split(key, 2 + 2 * NUM_MODELS)

    # EnsembleGP.__init__ parameters (deterministic synthetic init)
    z = (2.0 * jax.random.uniform(k_z, (M, D)) - 1.0).astype(jnp.float32)
    q_m = jax.random.normal(k_qm, (M, 1)).astype(jnp.float32)
    q_L = jnp.eye(M, dtype=jnp.float32)

    # Synthetic pre-trained sub-models: each has z, q_m, q_L, logZ
    models = []
    for i in range(NUM_MODELS):
        ka, kb = model_keys[2 * i], model_keys[2 * i + 1]
        mz = (2.0 * jax.random.uniform(ka, (Mk, D)) - 1.0).astype(jnp.float32)
        mqm = jax.random.normal(kb, (Mk, 1)).astype(jnp.float32)
        mqL = (jnp.eye(Mk)
               + 0.05 * jnp.tril(jax.random.normal(jax.random.fold_in(kb, 7),
                                                   (Mk, Mk)), -1)).astype(jnp.float32)
        models.append({"z": mz, "q_m": mqm, "q_L": mqL, "logZ": -10.0 - float(i)})

    zk_all, qmk_all, qLk_all, logz_sum = pack_models(models)
    loss = ensemble_gp_forward(z, q_m, q_L, zk_all, qmk_all, qLk_all, logz_sum)
    loss = jax.block_until_ready(loss)
    assert jnp.isfinite(loss), loss
    print("KERNEL_OK")
</pallas_src>

<mosaic_0001>
module attributes {stable_mosaic.version = 11 : i64} {
  func.func @_ensemble_gp_kernel(%arg0: memref<16x2xf32, #tpu.memory_space<vmem>>, %arg1: memref<16x1xf32, #tpu.memory_space<vmem>>, %arg2: memref<16x16xf32, #tpu.memory_space<vmem>>, %arg3: memref<2x16x2xf32, #tpu.memory_space<vmem>>, %arg4: memref<2x16x1xf32, #tpu.memory_space<vmem>>, %arg5: memref<2x16x16xf32, #tpu.memory_space<vmem>>, %arg6: memref<1x1xf32, #tpu.memory_space<vmem>>, %arg7: memref<1x1xf32, #tpu.memory_space<vmem>>) attributes {dimension_semantics = [], scalar_prefetch = 0 : i64, scratch_operands = 0 : i64, tpu.core_type = #tpu.core_type<tc>} {
    %c0 = arith.constant 0 : index
    %c0_0 = arith.constant 0 : index
    %0 = vector.load %arg0[%c0, %c0_0] : memref<16x2xf32, #tpu.memory_space<vmem>>, vector<16x2xf32>
    %c0_1 = arith.constant 0 : index
    %c0_2 = arith.constant 0 : index
    %1 = vector.load %arg1[%c0_1, %c0_2] : memref<16x1xf32, #tpu.memory_space<vmem>>, vector<16x1xf32>
    %cst = arith.constant dense<0.000000e+00> : vector<16x16xf32>
    %2 = tpu.matmul %0, %0, %cst {dimension_numbers = #tpu.dot_dimension_numbers<[1], [1], [0], [0], [0, 0, 1, 0], [], []>} : vector<16x2xf32>, vector<16x2xf32>, vector<16x16xf32> -> vector<16x16xf32>
    %3 = tpu.iota {dimensions = array<i32: 0>} : vector<16x16xi32>
    %4 = tpu.iota {dimensions = array<i32: 1>} : vector<16x16xi32>
    %5 = arith.cmpi eq, %3, %4 : vector<16x16xi32>
    %cst_3 = arith.constant 0.000000e+00 : f32
    %6 = vector.broadcast %cst_3 : f32 to vector<16x16xf32>
    %7 = arith.select %5, %2, %6 : vector<16x16xi1>, vector<16x16xf32>
    %cst_4 = arith.constant dense<0.000000e+00> : vector<16xf32>
    %8 = vector.multi_reduction <add>, %7, %cst_4 [1] : vector<16x16xf32> to vector<16xf32>
    %9 = vector.shape_cast %8 : vector<16xf32> to vector<16x1xf32>
    %cst_5 = arith.constant dense<0.000000e+00> : vector<16xf32>
    %10 = vector.multi_reduction <add>, %7, %cst_5 [0] : vector<16x16xf32> to vector<16xf32>
    %11 = vector.shape_cast %10 : vector<16xf32> to vector<1x16xf32>
    %12 = vector.broadcast %9 : vector<16x1xf32> to vector<16x16xf32>
    %13 = vector.broadcast %11 : vector<1x16xf32> to vector<16x16xf32>
    %14 = arith.addf %12, %13 : vector<16x16xf32>
    %cst_6 = arith.constant 2.000000e+00 : f32
    %15 = vector.broadcast %cst_6 : f32 to vector<16x16xf32>
    %16 = arith.mulf %15, %2 : vector<16x16xf32>
    %17 = arith.subf %14, %16 : vector<16x16xf32>
    %cst_7 = arith.constant 0.000000e+00 : f32
    %18 = vector.broadcast %cst_7 : f32 to vector<16x16xf32>
    %19 = arith.maximumf %17, %18 : vector<16x16xf32>
    %cst_8 = arith.constant -5.000000e-01 : f32
    %20 = vector.broadcast %cst_8 : f32 to vector<16x16xf32>
    %21 = arith.mulf %20, %19 : vector<16x16xf32>
    %cst_9 = arith.constant 2.500000e-01 : f32
    %22 = vector.broadcast %cst_9 : f32 to vector<16x16xf32>
    %23 = arith.divf %21, %22 : vector<16x16xf32>
    %24 = math.exp %23 : vector<16x16xf32>
    %cst_10 = arith.constant 1.000000e+00 : f32
    %25 = vector.broadcast %cst_10 : f32 to vector<16x16xf32>
    %26 = arith.mulf %25, %24 : vector<16x16xf32>
    %cst_11 = arith.constant 9.99999974E-5 : f32
    %27 = vector.broadcast %cst_11 : f32 to vector<16x16xf32>
    %28 = arith.addf %26, %27 : vector<16x16xf32>
    %29 = arith.select %5, %28, %26 : vector<16x16xi1>, vector<16x16xf32>
    %c0_12 = arith.constant 0 : index
    %c0_13 = arith.constant 0 : index
    %30 = vector.load %arg2[%c0_12, %c0_13] : memref<16x16xf32, #tpu.memory_space<vmem>>, vector<16x16xf32>
    %31 = tpu.iota {dimensions = array<i32: 0>} : vector<16x16xi32>
    %32 = tpu.iota {dimensions = array<i32: 1>} : vector<16x16xi32>
    %33 = arith.cmpi sge, %31, %32 : vector<16x16xi32>
    %cst_14 = arith.constant 0.000000e+00 : f32
    %34 = vector.broadcast %cst_14 : f32 to vector<16x16xf32>
    %35 = arith.select %33, %30, %34 : vector<16x16xi1>, vector<16x16xf32>
    %cst_15 = arith.constant dense<0.000000e+00> : vector<16x16xf32>
    %36 = tpu.matmul %35, %35, %cst_15 {dimension_numbers = #tpu.dot_dimension_numbers<[1], [1], [0], [0], [0, 0, 1, 0], [], []>} : vector<16x16xf32>, vector<16x16xf32>, vector<16x16xf32> -> vector<16x16xf32>
    %c0_16 = arith.constant 0 : index
    %c0_17 = arith.constant 0 : index
    %c0_18 = arith.constant 0 : index
    %37 = vector.load %arg3[%c0_16, %c0_17, %c0_18] : memref<2x16x2xf32, #tpu.memory_space<vmem>>, vector<1x16x2xf32>
    %38 = vector.shape_cast %37 : vector<1x16x2xf32> to vector<16x2xf32>
    %cst_19 = arith.constant dense<0.000000e+00> : vector<16x16xf32>
    %39 = tpu.matmul %38, %38, %cst_19 {dimension_numbers = #tpu.dot_dimension_numbers<[1], [1], [0], [0], [0, 0, 1, 0], [], []>} : vector<16x2xf32>, vector<16x2xf32>, vector<16x16xf32> -> vector<16x16xf32>
    %40 = tpu.iota {dimensions = array<i32: 0>} : vector<16x16xi32>
    %41 = tpu.iota {dimensions = array<i32: 1>} : vector<16x16xi32>
    %42 = arith.cmpi eq, %40, %41 : vector<16x16xi32>
    %cst_20 = arith.constant 0.000000e+00 : f32
    %43 = vector.broadcast %cst_20 : f32 to vector<16x16xf32>
    %44 = arith.select %42, %39, %43 : vector<16x16xi1>, vector<16x16xf32>
    %cst_21 = arith.constant dense<0.000000e+00> : vector<16xf32>
    %45 = vector.multi_reduction <add>, %44, %cst_21 [1] : vector<16x16xf32> to vector<16xf32>
    %46 = vector.shape_cast %45 : vector<16xf32> to vector<16x1xf32>
    %cst_22 = arith.constant dense<0.000000e+00> : vector<16xf32>
    %47 = vector.multi_reduction <add>, %44, %cst_22 [0] : vector<16x16xf32> to vector<16xf32>
    %48 = vector.shape_cast %47 : vector<16xf32> to vector<1x16xf32>
    %49 = vector.broadcast %46 : vector<16x1xf32> to vector<16x16xf32>
    %50 = vector.broadcast %48 : vector<1x16xf32> to vector<16x16xf32>
    %51 = arith.addf %49, %50 : vector<16x16xf32>
    %cst_23 = arith.constant 2.000000e+00 : f32
    %52 = vector.broadcast %cst_23 : f32 to vector<16x16xf32>
    %53 = arith.mulf %52, %39 : vector<16x16xf32>
    %54 = arith.subf %51, %53 : vector<16x16xf32>
    %cst_24 = arith.constant 0.000000e+00 : f32
    %55 = vector.broadcast %cst_24 : f32 to vector<16x16xf32>
    %56 = arith.maximumf %54, %55 : vector<16x16xf32>
    %cst_25 = arith.constant -5.000000e-01 : f32
    %57 = vector.broadcast %cst_25 : f32 to vector<16x16xf32>
    %58 = arith.mulf %57, %56 : vector<16x16xf32>
    %cst_26 = arith.constant 2.500000e-01 : f32
    %59 = vector.broadcast %cst_26 : f32 to vector<16x16xf32>
    %60 = arith.divf %58, %59 : vector<16x16xf32>
    %61 = math.exp %60 : vector<16x16xf32>
    %cst_27 = arith.constant 1.000000e+00 : f32
    %62 = vector.broadcast %cst_27 : f32 to vector<16x16xf32>
    %63 = arith.mulf %62, %61 : vector<16x16xf32>
    %cst_28 = arith.constant 9.99999974E-5 : f32
    %64 = vector.broadcast %cst_28 : f32 to vector<16x16xf32>
    %65 = arith.addf %63, %64 : vector<16x16xf32>
    %66 = arith.select %42, %65, %63 : vector<16x16xi1>, vector<16x16xf32>
    %cst_29 = arith.constant dense<0.000000e+00> : vector<16x16xf32>
    %67 = tpu.matmul %38, %0, %cst_29 {dimension_numbers = #tpu.dot_dimension_numbers<[1], [1], [0], [0], [0, 0, 1, 0], [], []>} : vector<16x2xf32>, vector<16x2xf32>, vector<16x16xf32> -> vector<16x16xf32>
    %68 = arith.mulf %38, %38 : vector<16x2xf32>
    %cst_30 = arith.constant dense<0.000000e+00> : vector<16xf32>
    %69 = vector.multi_reduction <add>, %68, %cst_30 [1] : vector<16x2xf32> to vector<16xf32>
    %70 = vector.shape_cast %69 : vector<16xf32> to vector<16x1xf32>
    %cst_31 = arith.constant 1.000000e+00 : f32
    %71 = vector.broadcast %cst_31 : f32 to vector<16x2xf32>
    %72 = arith.mulf %0, %0 : vector<16x2xf32>
    %cst_32 = arith.constant dense<0.000000e+00> : vector<16x16xf32>
    %73 = tpu.matmul %71, %72, %cst_32 {dimension_numbers = #tpu.dot_dimension_numbers<[1], [1], [0], [0], [0, 0, 1, 0], [], []>} : vector<16x2xf32>, vector<16x2xf32>, vector<16x16xf32> -> vector<16x16xf32>
    %74 = vector.broadcast %70 : vector<16x1xf32> to vector<16x16xf32>
    %75 = arith.addf %74, %73 : vector<16x16xf32>
    %cst_33 = arith.constant 2.000000e+00 : f32
    %76 = vector.broadcast %cst_33 : f32 to vector<16x16xf32>
    %77 = arith.mulf %76, %67 : vector<16x16xf32>
    %78 = arith.subf %75, %77 : vector<16x16xf32>
    %cst_34 = arith.constant 0.000000e+00 : f32
    %79 = vector.broadcast %cst_34 : f32 to vector<16x16xf32>
    %80 = arith.maximumf %78, %79 : vector<16x16xf32>
    %cst_35 = arith.constant -5.000000e-01 : f32
    %81 = vector.broadcast %cst_35 : f32 to vector<16x16xf32>
    %82 = arith.mulf %81, %80 : vector<16x16xf32>
    %cst_36 = arith.constant 2.500000e-01 : f32
    %83 = vector.broadcast %cst_36 : f32 to vector<16x16xf32>
    %84 = arith.divf %82, %83 : vector<16x16xf32>
    %85 = math.exp %84 : vector<16x16xf32>
    %cst_37 = arith.constant 1.000000e+00 : f32
    %86 = vector.broadcast %cst_37 : f32 to vector<16x16xf32>
    %87 = arith.mulf %86, %85 : vector<16x16xf32>
    %c0_38 = arith.constant 0 : index
    %c0_39 = arith.constant 0 : index
    %c0_40 = arith.constant 0 : index
    %88 = vector.load %arg5[%c0_38, %c0_39, %c0_40] : memref<2x16x16xf32, #tpu.memory_space<vmem>>, vector<1x16x16xf32>
    %89 = vector.shape_cast %88 : vector<1x16x16xf32> to vector<16x16xf32>
    %90 = tpu.iota {dimensions = array<i32: 0>} : vector<16x16xi32>
    %91 = tpu.iota {dimensions = array<i32: 1>} : vector<16x16xi32>
    %92 = arith.cmpi sge, %90, %91 : vector<16x16xi32>
    %cst_41 = arith.constant 0.000000e+00 : f32
    %93 = vector.broadcast %cst_41 : f32 to vector<16x16xf32>
    %94 = arith.select %92, %89, %93 : vector<16x16xi1>, vector<16x16xf32>
    %cst_42 = arith.constant dense<0.000000e+00> : vector<16x16xf32>
    %95 = tpu.matmul %94, %94, %cst_42 {dimension_numbers = #tpu.dot_dimension_numbers<[1], [1], [0], [0], [0, 0, 1, 0], [], []>} : vector<16x16xf32>, vector<16x16xf32>, vector<16x16xf32> -> vector<16x16xf32>
    %c1 = arith.constant 1 : index
    %c0_43 = arith.constant 0 : index
    %c0_44 = arith.constant 0 : index
    %96 = vector.load %arg3[%c1, %c0_43, %c0_44] : memref<2x16x2xf32, #tpu.memory_space<vmem>>, vector<1x16x2xf32>
    %97 = vector.shape_cast %96 : vector<1x16x2xf32> to vector<16x2xf32>
    %cst_45 = arith.constant dense<0.000000e+00> : vector<16x16xf32>
    %98 = tpu.matmul %97, %97, %cst_45 {dimension_numbers = #tpu.dot_dimension_numbers<[1], [1], [0], [0], [0, 0, 1, 0], [], []>} : vector<16x2xf32>, vector<16x2xf32>, vector<16x16xf32> -> vector<16x16xf32>
    %99 = tpu.iota {dimensions = array<i32: 0>} : vector<16x16xi32>
    %100 = tpu.iota {dimensions = array<i32: 1>} : vector<16x16xi32>
    %101 = arith.cmpi eq, %99, %100 : vector<16x16xi32>
    %cst_46 = arith.constant 0.000000e+00 : f32
    %102 = vector.broadcast %cst_46 : f32 to vector<16x16xf32>
    %103 = arith.select %101, %98, %102 : vector<16x16xi1>, vector<16x16xf32>
    %cst_47 = arith.constant dense<0.000000e+00> : vector<16xf32>
    %104 = vector.multi_reduction <add>, %103, %cst_47 [1] : vector<16x16xf32> to vector<16xf32>
    %105 = vector.shape_cast %104 : vector<16xf32> to vector<16x1xf32>
    %cst_48 = arith.constant dense<0.000000e+00> : vector<16xf32>
    %106 = vector.multi_reduction <add>, %103, %cst_48 [0] : vector<16x16xf32> to vector<16xf32>
    %107 = vector.shape_cast %106 : vector<16xf32> to vector<1x16xf32>
    %108 = vector.broadcast %105 : vector<16x1xf32> to vector<16x16xf32>
    %109 = vector.broadcast %107 : vector<1x16xf32> to vector<16x16xf32>
    %110 = arith.addf %108, %109 : vector<16x16xf32>
    %cst_49 = arith.constant 2.000000e+00 : f32
    %111 = vector.broadcast %cst_49 : f32 to vector<16x16xf32>
    %112 = arith.mulf %111, %98 : vector<16x16xf32>
    %113 = arith.subf %110, %112 : vector<16x16xf32>
    %cst_50 = arith.constant 0.000000e+00 : f32
    %114 = vector.broadcast %cst_50 : f32 to vector<16x16xf32>
    %115 = arith.maximumf %113, %114 : vector<16x16xf32>
    %cst_51 = arith.constant -5.000000e-01 : f32
    %116 = vector.broadcast %cst_51 : f32 to vector<16x16xf32>
    %117 = arith.mulf %116, %115 : vector<16x16xf32>
    %cst_52 = arith.constant 2.500000e-01 : f32
    %118 = vector.broadcast %cst_52 : f32 to vector<16x16xf32>
    %119 = arith.divf %117, %118 : vector<16x16xf32>
    %120 = math.exp %119 : vector<16x16xf32>
    %cst_53 = arith.constant 1.000000e+00 : f32
    %121 = vector.broadcast %cst_53 : f32 to vector<16x16xf32>
    %122 = arith.mulf %121, %120 : vector<16x16xf32>
    %cst_54 = arith.constant 9.99999974E-5 : f32
    %123 = vector.broadcast %cst_54 : f32 to vector<16x16xf32>
    %124 = arith.addf %122, %123 : vector<16x16xf32>
    %125 = arith.select %101, %124, %122 : vector<16x16xi1>, vector<16x16xf32>
    %cst_55 = arith.constant dense<0.000000e+00> : vector<16x16xf32>
    %126 = tpu.matmul %97, %0, %cst_55 {dimension_numbers = #tpu.dot_dimension_numbers<[1], [1], [0], [0], [0, 0, 1, 0], [], []>} : vector<16x2xf32>, vector<16x2xf32>, vector<16x16xf32> -> vector<16x16xf32>
    %127 = arith.mulf %97, %97 : vector<16x2xf32>
    %cst_56 = arith.constant dense<0.000000e+00> : vector<16xf32>
    %128 = vector.multi_reduction <add>, %127, %cst_56 [1] : vector<16x2xf32> to vector<16xf32>
    %129 = vector.shape_cast %128 : vector<16xf32> to vector<16x1xf32>
    %cst_57 = arith.constant 1.000000e+00 : f32
    %130 = vector.broadcast %cst_57 : f32 to vector<16x2xf32>
    %131 = arith.mulf %0, %0 : vector<16x2xf32>
    %cst_58 = arith.constant dense<0.000000e+00> : vector<16x16xf32>
    %132 = tpu.matmul %130, %131, %cst_58 {dimension_numbers = #tpu.dot_dimension_numbers<[1], [1], [0], [0], [0, 0, 1, 0], [], []>} : vector<16x2xf32>, vector<16x2xf32>, vector<16x16xf32> -> vector<16x16xf32>
    %133 = vector.broadcast %129 : vector<16x1xf32> to vector<16x16xf32>
    %134 = arith.addf %133, %132 : vector<16x16xf32>
    %cst_59 = arith.constant 2.000000e+00 : f32
    %135 = vector.broadcast %cst_59 : f32 to vector<16x16xf32>
    %136 = arith.mulf %135, %126 : vector<16x16xf32>
    %137 = arith.subf %134, %136 : vector<16x16xf32>
    %cst_60 = arith.constant 0.000000e+00 : f32
    %138 = vector.broadcast %cst_60 : f32 to vector<16x16xf32>
    %139 = arith.maximumf %137, %138 : vector<16x16xf32>
    %cst_61 = arith.constant -5.000000e-01 : f32
    %140 = vector.broadcast %cst_61 : f32 to vector<16x16xf32>
    %141 = arith.mulf %140, %139 : vector<16x16xf32>
    %cst_62 = arith.constant 2.500000e-01 : f32
    %142 = vector.broadcast %cst_62 : f32 to vector<16x16xf32>
    %143 = arith.divf %141, %142 : vector<16x16xf32>
    %144 = math.exp %143 : vector<16x16xf32>
    %cst_63 = arith.constant 1.000000e+00 : f32
    %145 = vector.broadcast %cst_63 : f32 to vector<16x16xf32>
    %146 = arith.mulf %145, %144 : vector<16x16xf32>
    %c1_64 = arith.constant 1 : index
    %c0_65 = arith.constant 0 : index
    %c0_66 = arith.constant 0 : index
    %147 = vector.load %arg5[%c1_64, %c0_65, %c0_66] : memref<2x16x16xf32, #tpu.memory_space<vmem>>, vector<1x16x16xf32>
    %148 = vector.shape_cast %147 : vector<1x16x16xf32> to vector<16x16xf32>
    %149 = tpu.iota {dimensions = array<i32: 0>} : vector<16x16xi32>
    %150 = tpu.iota {dimensions = array<i32: 1>} : vector<16x16xi32>
    %151 = arith.cmpi sge, %149, %150 : vector<16x16xi32>
    %cst_67 = arith.constant 0.000000e+00 : f32
    %152 = vector.broadcast %cst_67 : f32 to vector<16x16xf32>
    %153 = arith.select %151, %148, %152 : vector<16x16xi1>, vector<16x16xf32>
    %cst_68 = arith.constant dense<0.000000e+00> : vector<16x16xf32>
    %154 = tpu.matmul %153, %153, %cst_68 {dimension_numbers = #tpu.dot_dimension_numbers<[1], [1], [0], [0], [0, 0, 1, 0], [], []>} : vector<16x16xf32>, vector<16x16xf32>, vector<16x16xf32> -> vector<16x16xf32>
    %155 = tpu.iota {dimensions = array<i32: 0>} : vector<16x16xi32>
    %156 = tpu.iota {dimensions = array<i32: 1>} : vector<16x16xi32>
    %cst_69 = arith.constant 0.000000e+00 : f32
    %157 = vector.broadcast %cst_69 : f32 to vector<1x1xf32>
    %cst_70 = arith.constant 0.000000e+00 : f32
    %158 = vector.broadcast %cst_70 : f32 to vector<1x1xf32>
    %cst_71 = arith.constant 0.000000e+00 : f32
    %159 = vector.broadcast %cst_71 : f32 to vector<1x1xf32>
    %cst_72 = arith.constant 0.000000e+00 : f32
    %160 = vector.broadcast %cst_72 : f32 to vector<1x1xf32>
    %cst_73 = arith.constant 0.000000e+00 : f32
    %161 = vector.broadcast %cst_73 : f32 to vector<1x1xf32>
    %cst_74 = arith.constant 0.000000e+00 : f32
    %162 = vector.broadcast %cst_74 : f32 to vector<1x1xf32>
    %c0_i32 = arith.constant 0 : i32
    %c16_i32 = arith.constant 16 : i32
    %163 = arith.addi %c0_i32, %c16_i32 : i32
    %c1_i32 = arith.constant 1 : i32
    %164:12 = scf.for %arg8 = %c0_i32 to %163 step %c1_i32 iter_args(%arg9 = %29, %arg10 = %157, %arg11 = %36, %arg12 = %158, %arg13 = %66, %arg14 = %159, %arg15 = %125, %arg16 = %160, %arg17 = %95, %arg18 = %161, %arg19 = %154, %arg20 = %162) -> (vector<16x16xf32>, vector<1x1xf32>, vector<16x16xf32>, vector<1x1xf32>, vector<16x16xf32>, vector<1x1xf32>, vector<16x16xf32>, vector<1x1xf32>, vector<16x16xf32>, vector<1x1xf32>, vector<16x16xf32>, vector<1x1xf32>)  : i32 {
      %293 = vector.broadcast %arg8 : i32 to vector<16x16xi32>
      %294 = arith.cmpi eq, %155, %293 : vector<16x16xi32>
      %295 = vector.broadcast %arg8 : i32 to vector<16x16xi32>
      %296 = arith.cmpi eq, %156, %295 : vector<16x16xi32>
      %297 = arith.andi %294, %296 : vector<16x16xi1>
      %cst_138 = arith.constant 0.000000e+00 : f32
      %298 = vector.broadcast %cst_138 : f32 to vector<16x16xf32>
      %299 = arith.select %297, %arg9, %298 : vector<16x16xi1>, vector<16x16xf32>
      %cst_139 = arith.constant dense<0.000000e+00> : vector<16xf32>
      %300 = vector.multi_reduction <add>, %299, %cst_139 [1] : vector<16x16xf32> to vector<16xf32>
      %301 = vector.shape_cast %300 : vector<16xf32> to vector<16x1xf32>
      %cst_140 = arith.constant dense<0.000000e+00> : vector<1xf32>
      %302 = vector.multi_reduction <add>, %301, %cst_140 [0] : vector<16x1xf32> to vector<1xf32>
      %303 = vector.shape_cast %302 : vector<1xf32> to vector<1x1xf32>
      %cst_141 = arith.constant 0.000000e+00 : f32
      %304 = vector.broadcast %cst_141 : f32 to vector<16x16xf32>
      %305 = arith.select %296, %arg9, %304 : vector<16x16xi1>, vector<16x16xf32>
      %cst_142 = arith.constant dense<0.000000e+00> : vector<16xf32>
      %306 = vector.multi_reduction <add>, %305, %cst_142 [1] : vector<16x16xf32> to vector<16xf32>
      %307 = vector.shape_cast %306 : vector<16xf32> to vector<16x1xf32>
      %cst_143 = arith.constant 0.000000e+00 : f32
      %308 = vector.broadcast %cst_143 : f32 to vector<16x16xf32>
      %309 = arith.select %294, %arg9, %308 : vector<16x16xi1>, vector<16x16xf32>
      %cst_144 = arith.constant dense<0.000000e+00> : vector<16xf32>
      %310 = vector.multi_reduction <add>, %309, %cst_144 [0] : vector<16x16xf32> to vector<16xf32>
      %311 = vector.shape_cast %310 : vector<16xf32> to vector<1x16xf32>
      %cst_145 = arith.constant 1.000000e+00 : f32
      %312 = vector.broadcast %cst_145 : f32 to vector<1x1xf32>
      %313 = arith.divf %312, %303 : vector<1x1xf32>
      %314 = vector.broadcast %313 : vector<1x1xf32> to vector<16x1xf32>
      %315 = arith.mulf %307, %314 : vector<16x1xf32>
      %316 = vector.broadcast %315 : vector<16x1xf32> to vector<16x16xf32>
      %317 = vector.broadcast %311 : vector<1x16xf32> to vector<16x16xf32>
      %318 = arith.mulf %316, %317 : vector<16x16xf32>
      %319 = arith.subf %arg9, %318 : vector<16x16xf32>
      %320 = vector.broadcast %313 : vector<1x1xf32> to vector<16x1xf32>
      %321 = arith.mulf %307, %320 : vector<16x1xf32>
      %322 = vector.shape_cast %321 : vector<16x1xf32> to vector<16x1xf32>
      %323 = vector.broadcast %322 : vector<16x1xf32> to vector<16x16xf32>
      %324 = arith.select %296, %323, %319 : vector<16x16xi1>, vector<16x16xf32>
      %325 = vector.broadcast %313 : vector<1x1xf32> to vector<1x16xf32>
      %326 = arith.mulf %311, %325 : vector<1x16xf32>
      %327 = vector.shape_cast %326 : vector<1x16xf32> to vector<1x16xf32>
      %328 = vector.broadcast %327 : vector<1x16xf32> to vector<16x16xf32>
      %329 = arith.select %294, %328, %324 : vector<16x16xi1>, vector<16x16xf32>
      %cst_146 = arith.constant 0.000000e+00 : f32
      %330 = vector.broadcast %cst_146 : f32 to vector<1x1xf32>
      %331 = arith.subf %330, %313 : vector<1x1xf32>
      %332 = vector.shape_cast %331 : vector<1x1xf32> to vector<1x1xf32>
      %333 = vector.broadcast %332 : vector<1x1xf32> to vector<16x16xf32>
      %334 = arith.select %297, %333, %329 : vector<16x16xi1>, vector<16x16xf32>
      %335 = math.log %303 : vector<1x1xf32>
      %336 = arith.addf %arg10, %335 : vector<1x1xf32>
      %cst_147 = arith.constant 0.000000e+00 : f32
      %337 = vector.broadcast %cst_147 : f32 to vector<16x16xf32>
      %338 = arith.select %297, %arg11, %337 : vector<16x16xi1>, vector<16x16xf32>
      %cst_148 = arith.constant dense<0.000000e+00> : vector<16xf32>
      %339 = vector.multi_reduction <add>, %338, %cst_148 [1] : vector<16x16xf32> to vector<16xf32>
      %340 = vector.shape_cast %339 : vector<16xf32> to vector<16x1xf32>
      %cst_149 = arith.constant dense<0.000000e+00> : vector<1xf32>
      %341 = vector.multi_reduction <add>, %340, %cst_149 [0] : vector<16x1xf32> to vector<1xf32>
      %342 = vector.shape_cast %341 : vector<1xf32> to vector<1x1xf32>
      %cst_150 = arith.constant 0.000000e+00 : f32
      %343 = vector.broadcast %cst_150 : f32 to vector<16x16xf32>
      %344 = arith.select %296, %arg11, %343 : vector<16x16xi1>, vector<16x16xf32>
      %cst_151 = arith.constant dense<0.000000e+00> : vector<16xf32>
      %345 = vector.multi_reduction <add>, %344, %cst_151 [1] : vector<16x16xf32> to vector<16xf32>
      %346 = vector.shape_cast %345 : vector<16xf32> to vector<16x1xf32>
      %cst_152 = arith.constant 0.000000e+00 : f32
      %347 = vector.broadcast %cst_152 : f32 to vector<16x16xf32>
      %348 = arith.select %294, %arg11, %347 : vector<16x16xi1>, vector<16x16xf32>
      %cst_153 = arith.constant dense<0.000000e+00> : vector<16xf32>
      %349 = vector.multi_reduction <add>, %348, %cst_153 [0] : vector<16x16xf32> to vector<16xf32>
      %350 = vector.shape_cast %349 : vector<16xf32> to vector<1x16xf32>
      %cst_154 = arith.constant 1.000000e+00 : f32
      %351 = vector.broadcast %cst_154 : f32 to vector<1x1xf32>
      %352 = arith.divf %351, %342 : vector<1x1xf32>
      %353 = vector.broadcast %352 : vector<1x1xf32> to vector<16x1xf32>
      %354 = arith.mulf %346, %353 : vector<16x1xf32>
      %355 = vector.broadcast %354 : vector<16x1xf32> to vector<16x16xf32>
      %356 = vector.broadcast %350 : vector<1x16xf32> to vector<16x16xf32>
      %357 = arith.mulf %355, %356 : vector<16x16xf32>
      %358 = arith.subf %arg11, %357 : vector<16x16xf32>
      %359 = vector.broadcast %352 : vector<1x1xf32> to vector<16x1xf32>
      %360 = arith.mulf %346, %359 : vector<16x1xf32>
      %361 = vector.shape_cast %360 : vector<16x1xf32> to vector<16x1xf32>
      %362 = vector.broadcast %361 : vector<16x1xf32> to vector<16x16xf32>
      %363 = arith.select %296, %362, %358 : vector<16x16xi1>, vector<16x16xf32>
      %364 = vector.broadcast %352 : vector<1x1xf32> to vector<1x16xf32>
      %365 = arith.mulf %350, %364 : vector<1x16xf32>
      %366 = vector.shape_cast %365 : vector<1x16xf32> to vector<1x16xf32>
      %367 = vector.broadcast %366 : vector<1x16xf32> to vector<16x16xf32>
      %368 = arith.select %294, %367, %363 : vector<16x16xi1>, vector<16x16xf32>
      %cst_155 = arith.constant 0.000000e+00 : f32
      %369 = vector.broadcast %cst_155 : f32 to vector<1x1xf32>
      %370 = arith.subf %369, %352 : vector<1x1xf32>
      %371 = vector.shape_cast %370 : vector<1x1xf32> to vector<1x1xf32>
      %372 = vector.broadcast %371 : vector<1x1xf32> to vector<16x16xf32>
      %373 = arith.select %297, %372, %368 : vector<16x16xi1>, vector<16x16xf32>
      %374 = math.log %342 : vector<1x1xf32>
      %375 = arith.addf %arg12, %374 : vector<1x1xf32>
      %cst_156 = arith.constant 0.000000e+00 : f32
      %376 = vector.broadcast %cst_156 : f32 to vector<16x16xf32>
      %377 = arith.select %297, %arg13, %376 : vector<16x16xi1>, vector<16x16xf32>
      %cst_157 = arith.constant dense<0.000000e+00> : vector<16xf32>
      %378 = vector.multi_reduction <add>, %377, %cst_157 [1] : vector<16x16xf32> to vector<16xf32>
      %379 = vector.shape_cast %378 : vector<16xf32> to vector<16x1xf32>
      %cst_158 = arith.constant dense<0.000000e+00> : vector<1xf32>
      %380 = vector.multi_reduction <add>, %379, %cst_158 [0] : vector<16x1xf32> to vector<1xf32>
      %381 = vector.shape_cast %380 : vector<1xf32> to vector<1x1xf32>
      %cst_159 = arith.constant 0.000000e+00 : f32
      %382 = vector.broadcast %cst_159 : f32 to vector<16x16xf32>
      %383 = arith.select %296, %arg13, %382 : vector<16x16xi1>, vector<16x16xf32>
      %cst_160 = arith.constant dense<0.000000e+00> : vector<16xf32>
      %384 = vector.multi_reduction <add>, %383, %cst_160 [1] : vector<16x16xf32> to vector<16xf32>
      %385 = vector.shape_cast %384 : vector<16xf32> to vector<16x1xf32>
      %cst_161 = arith.constant 0.000000e+00 : f32
      %386 = vector.broadcast %cst_161 : f32 to vector<16x16xf32>
      %387 = arith.select %294, %arg13, %386 : vector<16x16xi1>, vector<16x16xf32>
      %cst_162 = arith.constant dense<0.000000e+00> : vector<16xf32>
      %388 = vector.multi_reduction <add>, %387, %cst_162 [0] : vector<16x16xf32> to vector<16xf32>
      %389 = vector.shape_cast %388 : vector<16xf32> to vector<1x16xf32>
      %cst_163 = arith.constant 1.000000e+00 : f32
      %390 = vector.broadcast %cst_163 : f32 to vector<1x1xf32>
      %391 = arith.divf %390, %381 : vector<1x1xf32>
      %392 = vector.broadcast %391 : vector<1x1xf32> to vector<16x1xf32>
      %393 = arith.mulf %385, %392 : vector<16x1xf32>
      %394 = vector.broadcast %393 : vector<16x1xf32> to vector<16x16xf32>
      %395 = vector.broadcast %389 : vector<1x16xf32> to vector<16x16xf32>
      %396 = arith.mulf %394, %395 : vector<16x16xf32>
      %397 = arith.subf %arg13, %396 : vector<16x16xf32>
      %398 = vector.broadcast %391 : vector<1x1xf32> to vector<16x1xf32>
      %399 = arith.mulf %385, %398 : vector<16x1xf32>
      %400 = vector.shape_cast %399 : vector<16x1xf32> to vector<16x1xf32>
      %401 = vector.broadcast %400 : vector<16x1xf32> to vector<16x16xf32>
      %402 = arith.select %296, %401, %397 : vector<16x16xi1>, vector<16x16xf32>
      %403 = vector.broadcast %391 : vector<1x1xf32> to vector<1x16xf32>
      %404 = arith.mulf %389, %403 : vector<1x16xf32>
      %405 = vector.shape_cast %404 : vector<1x16xf32> to vector<1x16xf32>
      %406 = vector.broadcast %405 : vector<1x16xf32> to vector<16x16xf32>
      %407 = arith.select %294, %406, %402 : vector<16x16xi1>, vector<16x16xf32>
      %cst_164 = arith.constant 0.000000e+00 : f32
      %408 = vector.broadcast %cst_164 : f32 to vector<1x1xf32>
      %409 = arith.subf %408, %391 : vector<1x1xf32>
      %410 = vector.shape_cast %409 : vector<1x1xf32> to vector<1x1xf32>
      %411 = vector.broadcast %410 : vector<1x1xf32> to vector<16x16xf32>
      %412 = arith.select %297, %411, %407 : vector<16x16xi1>, vector<16x16xf32>
      %413 = math.log %381 : vector<1x1xf32>
      %414 = arith.addf %arg14, %413 : vector<1x1xf32>
      %cst_165 = arith.constant 0.000000e+00 : f32
      %415 = vector.broadcast %cst_165 : f32 to vector<16x16xf32>
      %416 = arith.select %297, %arg15, %415 : vector<16x16xi1>, vector<16x16xf32>
      %cst_166 = arith.constant dense<0.000000e+00> : vector<16xf32>
      %417 = vector.multi_reduction <add>, %416, %cst_166 [1] : vector<16x16xf32> to vector<16xf32>
      %418 = vector.shape_cast %417 : vector<16xf32> to vector<16x1xf32>
      %cst_167 = arith.constant dense<0.000000e+00> : vector<1xf32>
      %419 = vector.multi_reduction <add>, %418, %cst_167 [0] : vector<16x1xf32> to vector<1xf32>
      %420 = vector.shape_cast %419 : vector<1xf32> to vector<1x1xf32>
      %cst_168 = arith.constant 0.000000e+00 : f32
      %421 = vector.broadcast %cst_168 : f32 to vector<16x16xf32>
      %422 = arith.select %296, %arg15, %421 : vector<16x16xi1>, vector<16x16xf32>
      %cst_169 = arith.constant dense<0.000000e+00> : vector<16xf32>
      %423 = vector.multi_reduction <add>, %422, %cst_169 [1] : vector<16x16xf32> to vector<16xf32>
      %424 = vector.shape_cast %423 : vector<16xf32> to vector<16x1xf32>
      %cst_170 = arith.constant 0.000000e+00 : f32
      %425 = vector.broadcast %cst_170 : f32 to vector<16x16xf32>
      %426 = arith.select %294, %arg15, %425 : vector<16x16xi1>, vector<16x16xf32>
      %cst_171 = arith.constant dense<0.000000e+00> : vector<16xf32>
      %427 = vector.multi_reduction <add>, %426, %cst_171 [0] : vector<16x16xf32> to vector<16xf32>
      %428 = vector.shape_cast %427 : vector<16xf32> to vector<1x16xf32>
      %cst_172 = arith.constant 1.000000e+00 : f32
      %429 = vector.broadcast %cst_172 : f32 to vector<1x1xf32>
      %430 = arith.divf %429, %420 : vector<1x1xf32>
      %431 = vector.broadcast %430 : vector<1x1xf32> to vector<16x1xf32>
      %432 = arith.mulf %424, %431 : vector<16x1xf32>
      %433 = vector.broadcast %432 : vector<16x1xf32> to vector<16x16xf32>
      %434 = vector.broadcast %428 : vector<1x16xf32> to vector<16x16xf32>
      %435 = arith.mulf %433, %434 : vector<16x16xf32>
      %436 = arith.subf %arg15, %435 : vector<16x16xf32>
      %437 = vector.broadcast %430 : vector<1x1xf32> to vector<16x1xf32>
      %438 = arith.mulf %424, %437 : vector<16x1xf32>
      %439 = vector.shape_cast %438 : vector<16x1xf32> to vector<16x1xf32>
      %440 = vector.broadcast %439 : vector<16x1xf32> to vector<16x16xf32>
      %441 = arith.select %296, %440, %436 : vector<16x16xi1>, vector<16x16xf32>
      %442 = vector.broadcast %430 : vector<1x1xf32> to vector<1x16xf32>
      %443 = arith.mulf %428, %442 : vector<1x16xf32>
      %444 = vector.shape_cast %443 : vector<1x16xf32> to vector<1x16xf32>
      %445 = vector.broadcast %444 : vector<1x16xf32> to vector<16x16xf32>
      %446 = arith.select %294, %445, %441 : vector<16x16xi1>, vector<16x16xf32>
      %cst_173 = arith.constant 0.000000e+00 : f32
      %447 = vector.broadcast %cst_173 : f32 to vector<1x1xf32>
      %448 = arith.subf %447, %430 : vector<1x1xf32>
      %449 = vector.shape_cast %448 : vector<1x1xf32> to vector<1x1xf32>
      %450 = vector.broadcast %449 : vector<1x1xf32> to vector<16x16xf32>
      %451 = arith.select %297, %450, %446 : vector<16x16xi1>, vector<16x16xf32>
      %452 = math.log %420 : vector<1x1xf32>
      %453 = arith.addf %arg16, %452 : vector<1x1xf32>
      %cst_174 = arith.constant 0.000000e+00 : f32
      %454 = vector.broadcast %cst_174 : f32 to vector<16x16xf32>
      %455 = arith.select %297, %arg17, %454 : vector<16x16xi1>, vector<16x16xf32>
      %cst_175 = arith.constant dense<0.000000e+00> : vector<16xf32>
      %456 = vector.multi_reduction <add>, %455, %cst_175 [1] : vector<16x16xf32> to vector<16xf32>
      %457 = vector.shape_cast %456 : vector<16xf32> to vector<16x1xf32>
      %cst_176 = arith.constant dense<0.000000e+00> : vector<1xf32>
      %458 = vector.multi_reduction <add>, %457, %cst_176 [0] : vector<16x1xf32> to vector<1xf32>
      %459 = vector.shape_cast %458 : vector<1xf32> to vector<1x1xf32>
      %cst_177 = arith.constant 0.000000e+00 : f32
      %460 = vector.broadcast %cst_177 : f32 to vector<16x16xf32>
      %461 = arith.select %296, %arg17, %460 : vector<16x16xi1>, vector<16x16xf32>
      %cst_178 = arith.constant dense<0.000000e+00> : vector<16xf32>
      %462 = vector.multi_reduction <add>, %461, %cst_178 [1] : vector<16x16xf32> to vector<16xf32>
      %463 = vector.shape_cast %462 : vector<16xf32> to vector<16x1xf32>
      %cst_179 = arith.constant 0.000000e+00 : f32
      %464 = vector.broadcast %cst_179 : f32 to vector<16x16xf32>
      %465 = arith.select %294, %arg17, %464 : vector<16x16xi1>, vector<16x16xf32>
      %cst_180 = arith.constant dense<0.000000e+00> : vector<16xf32>
      %466 = vector.multi_reduction <add>, %465, %cst_180 [0] : vector<16x16xf32> to vector<16xf32>
      %467 = vector.shape_cast %466 : vector<16xf32> to vector<1x16xf32>
      %cst_181 = arith.constant 1.000000e+00 : f32
      %468 = vector.broadcast %cst_181 : f32 to vector<1x1xf32>
      %469 = arith.divf %468, %459 : vector<1x1xf32>
      %470 = vector.broadcast %469 : vector<1x1xf32> to vector<16x1xf32>
      %471 = arith.mulf %463, %470 : vector<16x1xf32>
      %472 = vector.broadcast %471 : vector<16x1xf32> to vector<16x16xf32>
      %473 = vector.broadcast %467 : vector<1x16xf32> to vector<16x16xf32>
      %474 = arith.mulf %472, %473 : vector<16x16xf32>
      %475 = arith.subf %arg17, %474 : vector<16x16xf32>
      %476 = vector.broadcast %469 : vector<1x1xf32> to vector<16x1xf32>
      %477 = arith.mulf %463, %476 : vector<16x1xf32>
      %478 = vector.shape_cast %477 : vector<16x1xf32> to vector<16x1xf32>
      %479 = vector.broadcast %478 : vector<16x1xf32> to vector<16x16xf32>
      %480 = arith.select %296, %479, %475 : vector<16x16xi1>, vector<16x16xf32>
      %481 = vector.broadcast %469 : vector<1x1xf32> to vector<1x16xf32>
      %482 = arith.mulf %467, %481 : vector<1x16xf32>
      %483 = vector.shape_cast %482 : vector<1x16xf32> to vector<1x16xf32>
      %484 = vector.broadcast %483 : vector<1x16xf32> to vector<16x16xf32>
      %485 = arith.select %294, %484, %480 : vector<16x16xi1>, vector<16x16xf32>
      %cst_182 = arith.constant 0.000000e+00 : f32
      %486 = vector.broadcast %cst_182 : f32 to vector<1x1xf32>
      %487 = arith.subf %486, %469 : vector<1x1xf32>
      %488 = vector.shape_cast %487 : vector<1x1xf32> to vector<1x1xf32>
      %489 = vector.broadcast %488 : vector<1x1xf32> to vector<16x16xf32>
      %490 = arith.select %297, %489, %485 : vector<16x16xi1>, vector<16x16xf32>
      %491 = math.log %459 : vector<1x1xf32>
      %492 = arith.addf %arg18, %491 : vector<1x1xf32>
      %cst_183 = arith.constant 0.000000e+00 : f32
      %493 = vector.broadcast %cst_183 : f32 to vector<16x16xf32>
      %494 = arith.select %297, %arg19, %493 : vector<16x16xi1>, vector<16x16xf32>
      %cst_184 = arith.constant dense<0.000000e+00> : vector<16xf32>
      %495 = vector.multi_reduction <add>, %494, %cst_184 [1] : vector<16x16xf32> to vector<16xf32>
      %496 = vector.shape_cast %495 : vector<16xf32> to vector<16x1xf32>
      %cst_185 = arith.constant dense<0.000000e+00> : vector<1xf32>
      %497 = vector.multi_reduction <add>, %496, %cst_185 [0] : vector<16x1xf32> to vector<1xf32>
      %498 = vector.shape_cast %497 : vector<1xf32> to vector<1x1xf32>
      %cst_186 = arith.constant 0.000000e+00 : f32
      %499 = vector.broadcast %cst_186 : f32 to vector<16x16xf32>
      %500 = arith.select %296, %arg19, %499 : vector<16x16xi1>, vector<16x16xf32>
      %cst_187 = arith.constant dense<0.000000e+00> : vector<16xf32>
      %501 = vector.multi_reduction <add>, %500, %cst_187 [1] : vector<16x16xf32> to vector<16xf32>
      %502 = vector.shape_cast %501 : vector<16xf32> to vector<16x1xf32>
      %cst_188 = arith.constant 0.000000e+00 : f32
      %503 = vector.broadcast %cst_188 : f32 to vector<16x16xf32>
      %504 = arith.select %294, %arg19, %503 : vector<16x16xi1>, vector<16x16xf32>
      %cst_189 = arith.constant dense<0.000000e+00> : vector<16xf32>
      %505 = vector.multi_reduction <add>, %504, %cst_189 [0] : vector<16x16xf32> to vector<16xf32>
      %506 = vector.shape_cast %505 : vector<16xf32> to vector<1x16xf32>
      %cst_190 = arith.constant 1.000000e+00 : f32
      %507 = vector.broadcast %cst_190 : f32 to vector<1x1xf32>
      %508 = arith.divf %507, %498 : vector<1x1xf32>
      %509 = vector.broadcast %508 : vector<1x1xf32> to vector<16x1xf32>
      %510 = arith.mulf %502, %509 : vector<16x1xf32>
      %511 = vector.broadcast %510 : vector<16x1xf32> to vector<16x16xf32>
      %512 = vector.broadcast %506 : vector<1x16xf32> to vector<16x16xf32>
      %513 = arith.mulf %511, %512 : vector<16x16xf32>
      %514 = arith.subf %arg19, %513 : vector<16x16xf32>
      %515 = vector.broadcast %508 : vector<1x1xf32> to vector<16x1xf32>
      %516 = arith.mulf %502, %515 : vector<16x1xf32>
      %517 = vector.shape_cast %516 : vector<16x1xf32> to vector<16x1xf32>
      %518 = vector.broadcast %517 : vector<16x1xf32> to vector<16x16xf32>
      %519 = arith.select %296, %518, %514 : vector<16x16xi1>, vector<16x16xf32>
      %520 = vector.broadcast %508 : vector<1x1xf32> to vector<1x16xf32>
      %521 = arith.mulf %506, %520 : vector<1x16xf32>
      %522 = vector.shape_cast %521 : vector<1x16xf32> to vector<1x16xf32>
      %523 = vector.broadcast %522 : vector<1x16xf32> to vector<16x16xf32>
      %524 = arith.select %294, %523, %519 : vector<16x16xi1>, vector<16x16xf32>
      %cst_191 = arith.constant 0.000000e+00 : f32
      %525 = vector.broadcast %cst_191 : f32 to vector<1x1xf32>
      %526 = arith.subf %525, %508 : vector<1x1xf32>
      %527 = vector.shape_cast %526 : vector<1x1xf32> to vector<1x1xf32>
      %528 = vector.broadcast %527 : vector<1x1xf32> to vector<16x16xf32>
      %529 = arith.select %297, %528, %524 : vector<16x16xi1>, vector<16x16xf32>
      %530 = math.log %498 : vector<1x1xf32>
      %531 = arith.addf %arg20, %530 : vector<1x1xf32>
      scf.yield %334, %336, %373, %375, %412, %414, %451, %453, %490, %492, %529, %531 : vector<16x16xf32>, vector<1x1xf32>, vector<16x16xf32>, vector<1x1xf32>, vector<16x16xf32>, vector<1x1xf32>, vector<16x16xf32>, vector<1x1xf32>, vector<16x16xf32>, vector<1x1xf32>, vector<16x16xf32>, vector<1x1xf32>
    }
    %c16_i32_75 = arith.constant 16 : i32
    %cst_76 = arith.constant 0.000000e+00 : f32
    %165 = vector.broadcast %cst_76 : f32 to vector<16x16xf32>
    %166 = arith.subf %165, %164#0 : vector<16x16xf32>
    %cst_77 = arith.constant 0.000000e+00 : f32
    %167 = vector.broadcast %cst_77 : f32 to vector<16x16xf32>
    %168 = arith.subf %167, %164#2 : vector<16x16xf32>
    %cst_78 = arith.constant 0.000000e+00 : f32
    %169 = vector.broadcast %cst_78 : f32 to vector<16x16xf32>
    %170 = arith.subf %169, %164#4 : vector<16x16xf32>
    %cst_79 = arith.constant 0.000000e+00 : f32
    %171 = vector.broadcast %cst_79 : f32 to vector<16x16xf32>
    %172 = arith.subf %171, %164#6 : vector<16x16xf32>
    %cst_80 = arith.constant 0.000000e+00 : f32
    %173 = vector.broadcast %cst_80 : f32 to vector<16x16xf32>
    %174 = arith.subf %173, %164#8 : vector<16x16xf32>
    %cst_81 = arith.constant 0.000000e+00 : f32
    %175 = vector.broadcast %cst_81 : f32 to vector<16x16xf32>
    %176 = arith.subf %175, %164#10 : vector<16x16xf32>
    %177 = arith.subf %36, %29 : vector<16x16xf32>
    %cst_82 = arith.constant 0.000000e+00 : f32
    %178 = vector.broadcast %cst_82 : f32 to vector<1x1xf32>
    %cst_83 = arith.constant dense<0.000000e+00> : vector<16x16xf32>
    %179 = tpu.matmul %87, %166, %cst_83 {dimension_numbers = #tpu.dot_dimension_numbers<[1], [0], [0], [1], [0, 0, 1, 1], [], []>} : vector<16x16xf32>, vector<16x16xf32>, vector<16x16xf32> -> vector<16x16xf32>
    %cst_84 = arith.constant dense<0.000000e+00> : vector<16x1xf32>
    %180 = tpu.matmul %179, %1, %cst_84 {dimension_numbers = #tpu.dot_dimension_numbers<[1], [0], [0], [1], [0, 0, 1, 1], [], []>} : vector<16x16xf32>, vector<16x1xf32>, vector<16x1xf32> -> vector<16x1xf32>
    %cst_85 = arith.constant dense<0.000000e+00> : vector<16x16xf32>
    %181 = tpu.matmul %179, %177, %cst_85 {dimension_numbers = #tpu.dot_dimension_numbers<[1], [0], [0], [1], [0, 0, 1, 1], [], []>} : vector<16x16xf32>, vector<16x16xf32>, vector<16x16xf32> -> vector<16x16xf32>
    %cst_86 = arith.constant dense<0.000000e+00> : vector<16x16xf32>
    %182 = tpu.matmul %181, %179, %cst_86 {dimension_numbers = #tpu.dot_dimension_numbers<[1], [1], [0], [0], [0, 0, 1, 0], [], []>} : vector<16x16xf32>, vector<16x16xf32>, vector<16x16xf32> -> vector<16x16xf32>
    %183 = arith.addf %66, %182 : vector<16x16xf32>
    %c0_87 = arith.constant 0 : index
    %c0_88 = arith.constant 0 : index
    %c0_89 = arith.constant 0 : index
    %184 = vector.load %arg4[%c0_87, %c0_88, %c0_89] : memref<2x16x1xf32, #tpu.memory_space<vmem>>, vector<1x16x1xf32>
    %185 = vector.shape_cast %184 : vector<1x16x1xf32> to vector<16x1xf32>
    %186 = arith.subf %180, %185 : vector<16x1xf32>
    %187 = arith.mulf %174, %183 : vector<16x16xf32>
    %cst_90 = arith.constant dense<0.000000e+00> : vector<16xf32>
    %188 = vector.multi_reduction <add>, %187, %cst_90 [1] : vector<16x16xf32> to vector<16xf32>
    %189 = vector.shape_cast %188 : vector<16xf32> to vector<16x1xf32>
    %cst_91 = arith.constant dense<0.000000e+00> : vector<1xf32>
    %190 = vector.multi_reduction <add>, %189, %cst_91 [0] : vector<16x1xf32> to vector<1xf32>
    %191 = vector.shape_cast %190 : vector<1xf32> to vector<1x1xf32>
    %192 = arith.mulf %170, %183 : vector<16x16xf32>
    %cst_92 = arith.constant dense<0.000000e+00> : vector<16xf32>
    %193 = vector.multi_reduction <add>, %192, %cst_92 [1] : vector<16x16xf32> to vector<16xf32>
    %194 = vector.shape_cast %193 : vector<16xf32> to vector<16x1xf32>
    %cst_93 = arith.constant dense<0.000000e+00> : vector<1xf32>
    %195 = vector.multi_reduction <add>, %194, %cst_93 [0] : vector<16x1xf32> to vector<1xf32>
    %196 = vector.shape_cast %195 : vector<1xf32> to vector<1x1xf32>
    %cst_94 = arith.constant dense<0.000000e+00> : vector<16x1xf32>
    %197 = tpu.matmul %174, %186, %cst_94 {dimension_numbers = #tpu.dot_dimension_numbers<[1], [0], [0], [1], [0, 0, 1, 1], [], []>} : vector<16x16xf32>, vector<16x1xf32>, vector<16x1xf32> -> vector<16x1xf32>
    %198 = arith.mulf %186, %197 : vector<16x1xf32>
    %cst_95 = arith.constant dense<0.000000e+00> : vector<16xf32>
    %199 = vector.multi_reduction <add>, %198, %cst_95 [1] : vector<16x1xf32> to vector<16xf32>
    %200 = vector.shape_cast %199 : vector<16xf32> to vector<16x1xf32>
    %cst_96 = arith.constant dense<0.000000e+00> : vector<1xf32>
    %201 = vector.multi_reduction <add>, %200, %cst_96 [0] : vector<16x1xf32> to vector<1xf32>
    %202 = vector.shape_cast %201 : vector<1xf32> to vector<1x1xf32>
    %cst_97 = arith.constant dense<0.000000e+00> : vector<16x1xf32>
    %203 = tpu.matmul %170, %180, %cst_97 {dimension_numbers = #tpu.dot_dimension_numbers<[1], [0], [0], [1], [0, 0, 1, 1], [], []>} : vector<16x16xf32>, vector<16x1xf32>, vector<16x1xf32> -> vector<16x1xf32>
    %204 = arith.mulf %180, %203 : vector<16x1xf32>
    %cst_98 = arith.constant dense<0.000000e+00> : vector<16xf32>
    %205 = vector.multi_reduction <add>, %204, %cst_98 [1] : vector<16x1xf32> to vector<16xf32>
    %206 = vector.shape_cast %205 : vector<16xf32> to vector<16x1xf32>
    %cst_99 = arith.constant dense<0.000000e+00> : vector<1xf32>
    %207 = vector.multi_reduction <add>, %206, %cst_99 [0] : vector<16x1xf32> to vector<1xf32>
    %208 = vector.shape_cast %207 : vector<1xf32> to vector<1x1xf32>
    %cst_100 = arith.constant 0.000000e+00 : f32
    %209 = vector.broadcast %cst_100 : f32 to vector<1x1xf32>
    %210 = arith.subf %209, %191 : vector<1x1xf32>
    %211 = arith.subf %210, %202 : vector<1x1xf32>
    %cst_101 = arith.constant 29.4060326 : f32
    %212 = vector.broadcast %cst_101 : f32 to vector<1x1xf32>
    %213 = arith.addf %212, %164#9 : vector<1x1xf32>
    %214 = arith.subf %211, %213 : vector<1x1xf32>
    %cst_102 = arith.constant 0.000000e+00 : f32
    %215 = vector.broadcast %cst_102 : f32 to vector<1x1xf32>
    %216 = arith.subf %215, %196 : vector<1x1xf32>
    %217 = arith.subf %216, %208 : vector<1x1xf32>
    %cst_103 = arith.constant 29.4060326 : f32
    %218 = vector.broadcast %cst_103 : f32 to vector<1x1xf32>
    %219 = arith.addf %218, %164#5 : vector<1x1xf32>
    %220 = arith.subf %217, %219 : vector<1x1xf32>
    %221 = arith.subf %214, %220 : vector<1x1xf32>
    %cst_104 = arith.constant 5.000000e-01 : f32
    %222 = vector.broadcast %cst_104 : f32 to vector<1x1xf32>
    %223 = arith.mulf %222, %221 : vector<1x1xf32>
    %224 = arith.addf %178, %223 : vector<1x1xf32>
    %cst_105 = arith.constant dense<0.000000e+00> : vector<16x16xf32>
    %225 = tpu.matmul %146, %166, %cst_105 {dimension_numbers = #tpu.dot_dimension_numbers<[1], [0], [0], [1], [0, 0, 1, 1], [], []>} : vector<16x16xf32>, vector<16x16xf32>, vector<16x16xf32> -> vector<16x16xf32>
    %cst_106 = arith.constant dense<0.000000e+00> : vector<16x1xf32>
    %226 = tpu.matmul %225, %1, %cst_106 {dimension_numbers = #tpu.dot_dimension_numbers<[1], [0], [0], [1], [0, 0, 1, 1], [], []>} : vector<16x16xf32>, vector<16x1xf32>, vector<16x1xf32> -> vector<16x1xf32>
    %cst_107 = arith.constant dense<0.000000e+00> : vector<16x16xf32>
    %227 = tpu.matmul %225, %177, %cst_107 {dimension_numbers = #tpu.dot_dimension_numbers<[1], [0], [0], [1], [0, 0, 1, 1], [], []>} : vector<16x16xf32>, vector<16x16xf32>, vector<16x16xf32> -> vector<16x16xf32>
    %cst_108 = arith.constant dense<0.000000e+00> : vector<16x16xf32>
    %228 = tpu.matmul %227, %225, %cst_108 {dimension_numbers = #tpu.dot_dimension_numbers<[1], [1], [0], [0], [0, 0, 1, 0], [], []>} : vector<16x16xf32>, vector<16x16xf32>, vector<16x16xf32> -> vector<16x16xf32>
    %229 = arith.addf %125, %228 : vector<16x16xf32>
    %c1_109 = arith.constant 1 : index
    %c0_110 = arith.constant 0 : index
    %c0_111 = arith.constant 0 : index
    %230 = vector.load %arg4[%c1_109, %c0_110, %c0_111] : memref<2x16x1xf32, #tpu.memory_space<vmem>>, vector<1x16x1xf32>
    %231 = vector.shape_cast %230 : vector<1x16x1xf32> to vector<16x1xf32>
    %232 = arith.subf %226, %231 : vector<16x1xf32>
    %233 = arith.mulf %176, %229 : vector<16x16xf32>
    %cst_112 = arith.constant dense<0.000000e+00> : vector<16xf32>
    %234 = vector.multi_reduction <add>, %233, %cst_112 [1] : vector<16x16xf32> to vector<16xf32>
    %235 = vector.shape_cast %234 : vector<16xf32> to vector<16x1xf32>
    %cst_113 = arith.constant dense<0.000000e+00> : vector<1xf32>
    %236 = vector.multi_reduction <add>, %235, %cst_113 [0] : vector<16x1xf32> to vector<1xf32>
    %237 = vector.shape_cast %236 : vector<1xf32> to vector<1x1xf32>
    %238 = arith.mulf %172, %229 : vector<16x16xf32>
    %cst_114 = arith.constant dense<0.000000e+00> : vector<16xf32>
    %239 = vector.multi_reduction <add>, %238, %cst_114 [1] : vector<16x16xf32> to vector<16xf32>
    %240 = vector.shape_cast %239 : vector<16xf32> to vector<16x1xf32>
    %cst_115 = arith.constant dense<0.000000e+00> : vector<1xf32>
    %241 = vector.multi_reduction <add>, %240, %cst_115 [0] : vector<16x1xf32> to vector<1xf32>
    %242 = vector.shape_cast %241 : vector<1xf32> to vector<1x1xf32>
    %cst_116 = arith.constant dense<0.000000e+00> : vector<16x1xf32>
    %243 = tpu.matmul %176, %232, %cst_116 {dimension_numbers = #tpu.dot_dimension_numbers<[1], [0], [0], [1], [0, 0, 1, 1], [], []>} : vector<16x16xf32>, vector<16x1xf32>, vector<16x1xf32> -> vector<16x1xf32>
    %244 = arith.mulf %232, %243 : vector<16x1xf32>
    %cst_117 = arith.constant dense<0.000000e+00> : vector<16xf32>
    %245 = vector.multi_reduction <add>, %244, %cst_117 [1] : vector<16x1xf32> to vector<16xf32>
    %246 = vector.shape_cast %245 : vector<16xf32> to vector<16x1xf32>
    %cst_118 = arith.constant dense<0.000000e+00> : vector<1xf32>
    %247 = vector.multi_reduction <add>, %246, %cst_118 [0] : vector<16x1xf32> to vector<1xf32>
    %248 = vector.shape_cast %247 : vector<1xf32> to vector<1x1xf32>
    %cst_119 = arith.constant dense<0.000000e+00> : vector<16x1xf32>
    %249 = tpu.matmul %172, %226, %cst_119 {dimension_numbers = #tpu.dot_dimension_numbers<[1], [0], [0], [1], [0, 0, 1, 1], [], []>} : vector<16x16xf32>, vector<16x1xf32>, vector<16x1xf32> -> vector<16x1xf32>
    %250 = arith.mulf %226, %249 : vector<16x1xf32>
    %cst_120 = arith.constant dense<0.000000e+00> : vector<16xf32>
    %251 = vector.multi_reduction <add>, %250, %cst_120 [1] : vector<16x1xf32> to vector<16xf32>
    %252 = vector.shape_cast %251 : vector<16xf32> to vector<16x1xf32>
    %cst_121 = arith.constant dense<0.000000e+00> : vector<1xf32>
    %253 = vector.multi_reduction <add>, %252, %cst_121 [0] : vector<16x1xf32> to vector<1xf32>
    %254 = vector.shape_cast %253 : vector<1xf32> to vector<1x1xf32>
    %cst_122 = arith.constant 0.000000e+00 : f32
    %255 = vector.broadcast %cst_122 : f32 to vector<1x1xf32>
    %256 = arith.subf %255, %237 : vector<1x1xf32>
    %257 = arith.subf %256, %248 : vector<1x1xf32>
    %cst_123 = arith.constant 29.4060326 : f32
    %258 = vector.broadcast %cst_123 : f32 to vector<1x1xf32>
    %259 = arith.addf %258, %164#11 : vector<1x1xf32>
    %260 = arith.subf %257, %259 : vector<1x1xf32>
    %cst_124 = arith.constant 0.000000e+00 : f32
    %261 = vector.broadcast %cst_124 : f32 to vector<1x1xf32>
    %262 = arith.subf %261, %242 : vector<1x1xf32>
    %263 = arith.subf %262, %254 : vector<1x1xf32>
    %cst_125 = arith.constant 29.4060326 : f32
    %264 = vector.broadcast %cst_125 : f32 to vector<1x1xf32>
    %265 = arith.addf %264, %164#7 : vector<1x1xf32>
    %266 = arith.subf %263, %265 : vector<1x1xf32>
    %267 = arith.subf %260, %266 : vector<1x1xf32>
    %cst_126 = arith.constant 5.000000e-01 : f32
    %268 = vector.broadcast %cst_126 : f32 to vector<1x1xf32>
    %269 = arith.mulf %268, %267 : vector<1x1xf32>
    %270 = arith.addf %224, %269 : vector<1x1xf32>
    %c0_127 = arith.constant 0 : index
    %c0_128 = arith.constant 0 : index
    %271 = vector.load %arg6[%c0_127, %c0_128] : memref<1x1xf32, #tpu.memory_space<vmem>>, vector<1x1xf32>
    %272 = arith.addf %270, %271 : vector<1x1xf32>
    %273 = arith.mulf %168, %29 : vector<16x16xf32>
    %cst_129 = arith.constant dense<0.000000e+00> : vector<16xf32>
    %274 = vector.multi_reduction <add>, %273, %cst_129 [1] : vector<16x16xf32> to vector<16xf32>
    %275 = vector.shape_cast %274 : vector<16xf32> to vector<16x1xf32>
    %cst_130 = arith.constant dense<0.000000e+00> : vector<1xf32>
    %276 = vector.multi_reduction <add>, %275, %cst_130 [0] : vector<16x1xf32> to vector<1xf32>
    %277 = vector.shape_cast %276 : vector<1xf32> to vector<1x1xf32>
    %cst_131 = arith.constant dense<0.000000e+00> : vector<16x1xf32>
    %278 = tpu.matmul %168, %1, %cst_131 {dimension_numbers = #tpu.dot_dimension_numbers<[1], [0], [0], [1], [0, 0, 1, 1], [], []>} : vector<16x16xf32>, vector<16x1xf32>, vector<16x1xf32> -> vector<16x1xf32>
    %279 = arith.mulf %1, %278 : vector<16x1xf32>
    %cst_132 = arith.constant dense<0.000000e+00> : vector<16xf32>
    %280 = vector.multi_reduction <add>, %279, %cst_132 [1] : vector<16x1xf32> to vector<16xf32>
    %281 = vector.shape_cast %280 : vector<16xf32> to vector<16x1xf32>
    %cst_133 = arith.constant dense<0.000000e+00> : vector<1xf32>
    %282 = vector.multi_reduction <add>, %281, %cst_133 [0] : vector<16x1xf32> to vector<1xf32>
    %283 = vector.shape_cast %282 : vector<1xf32> to vector<1x1xf32>
    %284 = arith.addf %277, %283 : vector<1x1xf32>
    %cst_134 = arith.constant 1.600000e+01 : f32
    %285 = vector.broadcast %cst_134 : f32 to vector<1x1xf32>
    %286 = arith.subf %284, %285 : vector<1x1xf32>
    %287 = arith.addf %286, %164#3 : vector<1x1xf32>
    %288 = arith.subf %287, %164#1 : vector<1x1xf32>
    %cst_135 = arith.constant 5.000000e-01 : f32
    %289 = vector.broadcast %cst_135 : f32 to vector<1x1xf32>
    %290 = arith.mulf %289, %288 : vector<1x1xf32>
    %291 = arith.subf %290, %272 : vector<1x1xf32>
    %c0_136 = arith.constant 0 : index
    %c0_137 = arith.constant 0 : index
    %292 = vector.load %arg7[%c0_136, %c0_137] : memref<1x1xf32, #tpu.memory_space<vmem>>, vector<1x1xf32>
    tpu.vector_store %arg7[%c0_136, %c0_137], %291 {strides = array<i32>} : memref<1x1xf32, #tpu.memory_space<vmem>>, vector<1x1xf32>,
    return
  }
}

</mosaic_0001>

<bundles_post_ra>
// kernel: ensemble_gp_forward.1
= control target key start
LH: loop header
LB: loop body
LE: loop exit
PB: predicated region body
PF: predicated region fallthrough
CT: control target
= control target key end

     0   :  { %s4372_s0 = inlined_call_operand.vmem [shape: f32[16,2], index: 0, kind: input, shape index: {}]   ;;  %s4373_s1 = inlined_call_operand.vmem [shape: f32[16,1], index: 1, kind: input, shape index: {}]   ;;  %s4374_s2 = inlined_call_operand.vmem [shape: f32[16,16], index: 2, kind: input, shape index: {}]   ;;  %s4375_s3 = inlined_call_operand.vmem [shape: f32[2,16,2], index: 3, kind: input, shape index: {}]   ;;  %s4376_s4 = inlined_call_operand.vmem [shape: f32[2,16,1], index: 4, kind: input, shape index: {}]   ;;  %s4377_s5 = inlined_call_operand.vmem [shape: f32[2,16,16], index: 5, kind: input, shape index: {}]   ;;  %s4378_s6 = inlined_call_operand.<no memory space> [shape: f32[1,1], index: 6, kind: input, shape index: {}]   ;;  %s4379_s7 = inlined_call_operand.hbm [shape: f32[1,1], index: 7, kind: output, shape index: {}]  }
   0x1   :  { %v12_v0 = vstv %s4378_s6 }
   0x2   :  { %13 = vst [vmem:[#allocation2] sm:$0x1] %v12_v0 }
   0x3   :  { %14 = vsyncpa [#allocation4], 0  ;;  %v29_v1 = vld [vmem:[%s4372_s0] sm:$0xff]  ;;  %v30_v2 = vld [vmem:[%s4372_s0 + $0x8] sm:$0xff]  ;;  %vm33_vm0 = vcmask 15360   ;;  %v115_v3 = vlaneseq  ;;  %vm124_vm2 = vcmask 130048  }
   0x4   :  { %v3453_v4 = vld [vmem:[%s4373_s1] sm:$0xff]  ;;  %v3458_v5 = vld [vmem:[%s4373_s1 + $0x8] sm:$0xff]  ;;  %v3460_v6 = vpack.c.bf16 %v30_v2, %v29_v1  ;;  %vm3464_vm1 = vmpackc.low %vm33_vm0, %vm33_vm0  ;;  %2765 = vmatprep.mubr.msk.f32.mxu0 %vm33_vm0, %v29_v1  ;;  %v447_v16 = vmul.f32 %v29_v1, %v29_v1  ;;  %v448_v17 = vmul.f32 %v30_v2, %v30_v2  ;;  %v4402_v20 = vmov 0 }
   0x5   :  { %4395 = vst [vmem:[#allocation6_spill] sm:$0xff] %v3453_v4  ;;  %4396 = vst [vmem:[#allocation7_spill] sm:$0xff] %v3458_v5  ;;  %v3472_v8 = vld [vmem:[%s4375_s3] sm:$0xff]  ;;  %v3477_v9 = vld [vmem:[%s4375_s3 + $0x8] sm:$0xff]  ;;  %v3479_v10 = vshrl.u32 %v115_v3, 7  ;;  %v3481_v11 = vand.u32 127, %v115_v3 }
   0x6   :  { %2917 = vmatprep.subr.msk.bf16.mxu0 %vm3464_vm1, %v3460_v6  ;;  %v2927_v12 = vpack.c.bf16 %v3477_v9, %v3472_v8  ;;  %v159_v13 = vld [vmem:[%s4374_s2] sm:$0xff]  ;;  %v160_v15 = vld [vmem:[%s4374_s2 + $0x8] sm:$0xff]  ;;  %vm3515_vm5 = vmpackc.low %vm124_vm2, %vm124_vm2  ;;  %v2939_v22 = vpack.c.bf16 %v448_v17, %v447_v16  ;;  %v3399_v31 = vmov 1.0   ;;  %v440_v56 = vmul.f32 %v3477_v9, %v3477_v9 }
   0x7   :  { %4399 = vst [vmem:[#allocation8_spill] sm:$0xff] %v3479_v10  ;;  %4400 = vst [vmem:[#allocation9_spill] sm:$0xff] %v3481_v11  ;;  %2920 = vmatpush3.bf16.xpose.msk.msra.mxu0 %vm3464_vm1, %v3460_v6  ;;  %v3495_v14 = vadd.s32 8, %v3479_v10  ;;  %vm161_vm3 = vcmp.ge.s32.totalorder %v3479_v10, %v3481_v11  ;;  %v4403_v20 = vsel %vm3515_vm5, 4294967295, %v4402_v20  ;;  %v549_v23 = vld [vmem:[%s4377_s5] sm:$0xff]  ;;  %v550_v24 = vld [vmem:[%s4377_s5 + $0x8] sm:$0xff]  ;;  %vm3621_vm7 = vcmp.eq.s32.totalorder %v3479_v10, %v3481_v11 }
   0x8   :  { %2929 = vmatprep.subr.msk.bf16.mxu0 %vm3464_vm1, %v2927_v12  ;;  %v163_v18 = vsel %vm161_vm3, %v159_v13, 0.0  ;;  %4404 = vst [vmem:[#allocation11_spill] sm:$0xff] %v4403_v20  ;;  %v3542_v25 = vld [vmem:[%s4375_s3 + $0x10] sm:$0xff]  ;;  %v3547_v26 = vld [vmem:[%s4375_s3 + $0x18] sm:$0xff]  ;;  %v551_v27 = vsel %vm161_vm3, %v549_v23, 0.0  ;;  %v439_v59 = vmul.f32 %v3472_v8, %v3472_v8  ;;  %v444_v0 = vsel %vm33_vm0, %v440_v56, 0.0 }
   0x9   :  { %4401 = vst [vmem:[#allocation10_spill] sm:$0xff] %v3495_v14  ;;  %vm162_vm4 = vcmp.ge.s32.totalorder %v3495_v14, %v3481_v11  ;;  %2772 = vmatprep.mubr.msk.f32.mxu1 %vm124_vm2, %v163_v18  ;;  %v2951_v29 = vpack.c.bf16 %v3547_v26, %v3542_v25  ;;  %v2634_v32 = vld [vmem:[%s4377_s5 + $0x10] sm:$0xff]  ;;  %v2635_v33 = vld [vmem:[%s4377_s5 + $0x18] sm:$0xff]  ;;  %vm3615_vm6 = vcmp.eq.s32.totalorder %v3495_v14, %v3481_v11  ;;  %v3747_v37 = vmov 0.0   ;;  %s3787_s5 = smov 0  }
   0xa   :  { %v164_v19 = vsel %vm162_vm4, %v160_v15, 0.0  ;;  %v552_v28 = vsel %vm162_vm4, %v550_v24, 0.0  ;;  %v855_v34 = vsel %vm161_vm3, %v2634_v32, 0.0  ;;  %v856_v35 = vsel %vm162_vm4, %v2635_v33, 0.0 }
   0xb   :  { %v2921_v21 = vpack.c.bf16 %v164_v19, %v163_v18  ;;  %v2945_v30 = vpack.c.bf16 %v552_v28, %v551_v27  ;;  %v2963_v36 = vpack.c.bf16 %v856_v35, %v855_v34  ;;  %v829_v1 = vmul.f32 %v3547_v26, %v3547_v26 }
   0xc   :  { %v828_v3 = vmul.f32 %v3542_v25, %v3542_v25  ;;  %v3755_v38 = vmov 0.0  }
   0xd   :  { %2923 = vmatprep.subr.msk.bf16.mxu1 %vm3515_vm5, %v2921_v21 }
   0xe   :  { %2766 = vmatmul.mubr.msk.f32.vlgmr.msra.gmra.mrb[0].mxu0 %vm33_vm0, %v30_v2  ;;  %2926 = vmatpush3.bf16.xpose.msk.msra.mxu1 %vm3515_vm5, %v2921_v21  ;;  %v441_v2 = vsel %vm33_vm0, %v439_v59, 0.0 }
   0xf   :  { %2932 = vmatpush3.bf16.xpose.msk.msra.mxu0 %vm3464_vm1, %v2927_v12  ;;  %2779 = vmatprep.mubr.msk.f32.mxu0 %vm33_vm0, %v3472_v8 }
  0x10   :  { %2941 = vmatprep.subr.msk.bf16.mxu0 %vm3464_vm1, %v2939_v22  ;;  %2935 = vmatprep.subr.msk.bf16.mxu1 %vm3464_vm1, %v3460_v6 }
  0x15   :  { %2773 = vmatmul.mubr.msk.f32.vlgmr.msra.gmra.mrb[0].mxu1 %vm124_vm2, %v164_v19 }
  0x16   :  { %2780 = vmatmul.mubr.msk.f32.vlgmr.msra.gmra.mrb[2].mxu0 %vm33_vm0, %v3477_v9  ;;  %2938 = vmatpush3.bf16.xpose.msk.msra.mxu1 %vm3464_vm1, %v3460_v6 }
  0x17   :  { %2944 = vmatpush3.bf16.xpose.msk.msra.mxu0 %vm3464_vm1, %v2939_v22  ;;  %2793 = vmatprep.mubr.msk.f32.mxu0 %vm33_vm0, %v3399_v31 }
  0x18   :  { %2953 = vmatprep.subr.msk.bf16.mxu0 %vm3464_vm1, %v2951_v29  ;;  %2786 = vmatprep.mubr.msk.f32.mxu1 %vm33_vm0, %v3472_v8  ;;  %v833_v8 = vsel %vm33_vm0, %v829_v1, 0.0 }
  0x19   :  { %2947 = vmatprep.subr.msk.bf16.mxu1 %vm3515_vm5, %v2945_v30 }
  0x1d   :  { %2787 = vmatmul.mubr.msk.f32.vlgmr.msra.gmra.mrb[2].mxu1 %vm33_vm0, %v3477_v9  ;;  %v830_v9 = vsel %vm33_vm0, %v828_v3, 0.0 }
  0x1e   :  { %2794 = vmatmul.mubr.msk.f32.vlgmr.msra.gmra.mrb[4].mxu0 %vm33_vm0, %v3399_v31  ;;  %2950 = vmatpush3.bf16.xpose.msk.msra.mxu1 %vm3515_vm5, %v2945_v30 }
  0x1f   :  { %2956 = vmatpush3.bf16.xpose.msk.msra.mxu0 %vm3464_vm1, %v2951_v29  ;;  %2807 = vmatprep.mubr.msk.f32.mxu0 %vm33_vm0, %v3542_v25 }
  0x20   :  { %2800 = vmatprep.mubr.msk.f32.mxu1 %vm124_vm2, %v551_v27  ;;  %2959 = vmatprep.subr.msk.bf16.mxu1 %vm3464_vm1, %v3460_v6 }
  0x21   :  { %2965 = vmatprep.subr.msk.bf16.mxu0 %vm3515_vm5, %v2963_v36 }
  0x25   :  { %2801 = vmatmul.mubr.msk.f32.vlgmr.msra.gmra.mrb[4].mxu1 %vm124_vm2, %v552_v28 }
  0x26   :  { %2808 = vmatmul.mubr.msk.f32.vlgmr.msra.gmra.mrb[6].mxu0 %vm33_vm0, %v3547_v26  ;;  %2962 = vmatpush3.bf16.xpose.msk.msra.mxu1 %vm3464_vm1, %v3460_v6 }
  0x27   :  { %2814 = vmatprep.mubr.msk.f32.mxu1 %vm33_vm0, %v3542_v25  ;;  %2968 = vmatpush3.bf16.xpose.msk.msra.mxu0 %vm3515_vm5, %v2963_v36 }
  0x28   :  { %2821 = vmatprep.mubr.msk.f32.mxu0 %vm124_vm2, %v855_v34 }
  0x2d   :  { %2815 = vmatmul.mubr.msk.f32.vlgmr.msra.gmra.mrb[6].mxu1 %vm33_vm0, %v3547_v26 }
  0x2e   :  { %2822 = vmatmul.mubr.msk.f32.vlgmr.msra.gmra.mrb[8].mxu0 %vm124_vm2, %v856_v35 }
  0xe1   :  { %v2767_v39 = vpop.f32.mrb[0].mxu0 }
  0xe2   :  { %v3625_v40 = vpop.f32.mrb[1].mxu0  ;;  %v123_v41 = vsel %vm3615_vm6, %v2767_v39, 0.0  ;;  %v141_v33 = vmul.f32 2.0, %v2767_v39 }
  0xe3   :  { %v128_v42 = vsel %vm124_vm2, %v123_v41, 0.0  ;;  %v122_v43 = vsel %vm3621_vm7, %v3625_v40, 0.0 }
  0xe4   :  { %129 = vadd.xlane.f32.xlu0 %v128_v42  ;;  %v125_v44 = vsel %vm124_vm2, %v122_v43, 0.0  ;;  %v140_v43 = vmul.f32 2.0, %v3625_v40 }
  0xe5   :  { %v131_v45 = vadd.f32 %v128_v42, %v125_v44 }
  0xe7   :  { %v132_v22 = vrot.slane %v131_v45, 4 }
  0xe8   :  { %126 = vadd.xlane.f32.xlu0 %v125_v44  ;;  %v3672_v6 = vpop.f32.mrb[0].mxu1  }
  0xe9   :  { %v3634_v46 = vpop.f32.mrb[2].mxu0  ;;  %4409 = vst [vmem:[#allocation12_spill] sm:$0xff] %v3672_v6  ;;  %v3674_v7 = vpop.f32.mrb[1].mxu1   ;;  %v133_v23 = vadd.f32 %v132_v22, %v131_v45 }
  0xea   :  { %v3636_v47 = vpop.f32.mrb[3].mxu0  ;;  %v330_v48 = vsel %vm3615_vm6, %v3634_v46, 0.0  ;;  %4410 = vst [vmem:[#allocation13_spill] sm:$0xff] %v3674_v7  ;;  %v347_v56 = vmul.f32 2.0, %v3634_v46 }
  0xeb   :  { %v334_v49 = vsel %vm124_vm2, %v330_v48, 0.0  ;;  %v329_v50 = vsel %vm3621_vm7, %v3636_v47, 0.0  ;;  %v134_v24 = vrot.slane %v133_v23, 2  ;;  %v346_v1 = vmul.f32 2.0, %v3636_v47 }
  0xec   :  { %335 = vadd.xlane.f32.xlu1 %v334_v49  ;;  %v331_v51 = vsel %vm124_vm2, %v329_v50, 0.0 }
  0xed   :  { %v337_v52 = vadd.f32 %v334_v49, %v331_v51  ;;  %v135_v27 = vadd.f32 %v134_v24, %v133_v23 }
  0xef   :  { %v338_v25 = vrot.slane %v337_v52, 4  ;;  %v136_v29 = vrot.slane %v135_v27, 1 }
  0xf0   :  { %332 = vadd.xlane.f32.xlu1 %v331_v51  ;;  %v3678_v12 = vpop.f32.mrb[2].mxu1 }
  0xf1   :  { %v3646_v53 = vpop.f32.mrb[4].mxu0  ;;  %v3680_v13 = vpop.f32.mrb[3].mxu1  ;;  %v339_v26 = vadd.f32 %v338_v25, %v337_v52  ;;  %v137_v30 = vadd.f32 %v136_v29, %v135_v27 }
  0xf2   :  { %v3648_v54 = vpop.f32.mrb[5].mxu0 }
  0xf3   :  { %v340_v28 = vrot.slane %v339_v26, 2 }
  0xf5   :  { %v341_v31 = vadd.f32 %v340_v28, %v339_v26 }
  0xf7   :  { %v342_v41 = vrot.slane %v341_v31, 1 }
  0xf8   :  { %v3682_v15 = vpop.f32.mrb[4].mxu1  }
  0xf9   :  { %v3650_v55 = vpop.f32.mrb[6].mxu0  ;;  %v3684_v16 = vpop.f32.mrb[5].mxu1   ;;  %v343_v51 = vadd.f32 %v342_v41, %v341_v31 }
  0xfa   :  { %v3654_v57 = vpop.f32.mrb[7].mxu0  ;;  %v719_v58 = vsel %vm3615_vm6, %v3650_v55, 0.0 }
  0xfb   :  { %v723_v60 = vsel %vm124_vm2, %v719_v58, 0.0  ;;  %v718_v61 = vsel %vm3621_vm7, %v3654_v57, 0.0 }
  0xfc   :  { %724 = vadd.xlane.f32.xlu1 %v723_v60  ;;  %v720_v62 = vsel %vm124_vm2, %v718_v61, 0.0 }
  0xfd   :  { %v726_v63 = vadd.f32 %v723_v60, %v720_v62  ;;  %721 = vadd.xlane.f32.xlu0 %v720_v62 }
  0xff   :  { %v727_v35 = vrot.slane %v726_v63, 4 }
 0x100   :  { %445 = vadd.xlane.f32.xlu1 %v444_v0  ;;  %v3686_v17 = vpop.f32.mrb[6].mxu1 }
 0x101   :  { %442 = vadd.xlane.f32.xlu0 %v441_v2  ;;  %v3688_v18 = vpop.f32.mrb[7].mxu1  ;;  %v3690_v19 = vpop.f32.mrb[8].mxu0   ;;  %v728_v45 = vadd.f32 %v727_v35, %v726_v63 }
 0x102   :  { %v3692_v21 = vpop.f32.mrb[9].mxu0  }
 0x103   :  { %v729_v39 = vrot.slane %v728_v45, 2 }
 0x104   :  { %834 = vadd.xlane.f32.xlu1 %v833_v8 }
 0x105   :  { %831 = vadd.xlane.f32.xlu0 %v830_v9  ;;  %v730_v23 = vadd.f32 %v729_v39, %v728_v45 }
 0x107   :  { %v731_v27 = vrot.slane %v730_v23, 1 }
 0x109   :  { %v732_v47 = vadd.f32 %v731_v27, %v730_v23 }
 0x171   :  { %v130_v32 = vpop.xlane.xlu0 %129 }
 0x172   :  { %v139_v34 = vadd.f32 %v137_v30, %v130_v32 }
 0x174   :  { %v143_v36 = vsub.f32 %v139_v34, %v141_v33  ;;  %v736_v33 = vmul.f32 2.0, %v3650_v55 }
 0x175   :  { %v127_v42 = vpop.xlane.xlu0 %126 }
 0x176   :  { %v145_v44 = vmax.f32 %v143_v36, 0.0  ;;  %v138_v48 = vadd.f32 %v137_v30, %v127_v42  ;;  %v735_v36 = vmul.f32 2.0, %v3654_v57  ;;  %v535_v57 = vmul.f32 2.0, %v3680_v13 }
 0x178   :  { %v147_v49 = vmul.f32 -0.5, %v145_v44  ;;  %v142_v50 = vsub.f32 %v138_v48, %v140_v43 }
 0x179   :  { %v336_v52 = vpop.xlane.xlu1 %335 }
 0x17a   :  { %v150_v58 = vmul.f32 4.0, %v147_v49  ;;  %v144_v59 = vmax.f32 %v142_v50, 0.0  ;;  %v345_v60 = vadd.f32 %v343_v51, %v336_v52  ;;  %v536_v50 = vmul.f32 2.0, %v3678_v12 }
 0x17c   :  { %v153_v61 = vmul.f32 1.442695, %v150_v58  ;;  %v146_v62 = vmul.f32 -0.5, %v144_v59  ;;  %v349_v0 = vsub.f32 %v345_v60, %v347_v56 }
 0x17d   :  { %v333_v2 = vpop.xlane.xlu1 %332 }
 0x17e   :  { %3179 = vpow2.f32 %v153_v61  ;;  %v149_v40 = vmul.f32 4.0, %v146_v62  ;;  %v351_v3 = vmax.f32 %v349_v0, 0.0  ;;  %v344_v63 = vadd.f32 %v343_v51, %v333_v2 }
 0x17f   :  { %v839_v62 = vmul.f32 2.0, %v3686_v17 }
 0x180   :  { %v151_v8 = vmul.f32 1.442695, %v149_v40  ;;  %v353_v9 = vmul.f32 -0.5, %v351_v3  ;;  %v348_v22 = vsub.f32 %v344_v63, %v346_v1  ;;  %v838_v40 = vmul.f32 2.0, %v3688_v18 }
 0x182   :  { %3181 = vpow2.f32 %v151_v8  ;;  %v355_v46 = vmul.f32 4.0, %v353_v9  ;;  %v350_v24 = vmax.f32 %v348_v22, 0.0 }
 0x184   :  { %v358_v25 = vmul.f32 1.442695, %v355_v46  ;;  %v352_v26 = vmul.f32 -0.5, %v350_v24 }
 0x186   :  { %3183 = vpow2.f32 %v358_v25  ;;  %v354_v28 = vmul.f32 4.0, %v352_v26 }
 0x188   :  { %v3180_v29 = vpop.eup %3179  ;;  %v356_v30 = vmul.f32 1.442695, %v354_v28 }
 0x189   :  { %v156_v31 = vadd.f32 0.0001, %v3180_v29  ;;  %v725_v32 = vpop.xlane.xlu1 %724 }
 0x18a   :  { %3185 = vpow2.f32 %v356_v30  ;;  %v734_v34 = vadd.f32 %v732_v47, %v725_v32  ;;  %v722_v35 = vpop.xlane.xlu0 %721 }
 0x18b   :  { %v3701_v41 = vsel %vm3615_vm6, %v156_v31, %v3180_v29   ;;  %v733_v42 = vadd.f32 %v732_v47, %v722_v35 }
 0x18c   :  { %4411 = vst [vmem:[#allocation14_spill] sm:$0xff] %v3701_v41  ;;  %v3182_v43 = vpop.eup %3181  ;;  %v738_v44 = vsub.f32 %v734_v34, %v736_v33 }
 0x18d   :  { %v155_v48 = vadd.f32 0.0001, %v3182_v43  ;;  %v737_v45 = vsub.f32 %v733_v42, %v735_v36  ;;  %v446_v49 = vpop.xlane.xlu1 %445 }
 0x18e   :  { %v740_v51 = vmax.f32 %v738_v44, 0.0  ;;  %v534_v55 = vadd.f32 %v3646_v53, %v446_v49  ;;  %v443_v52 = vpop.xlane.xlu0 %442 }
 0x18f   :  { %v3707_v56 = vsel %vm3621_vm7, %v155_v48, %v3182_v43   ;;  %v739_v58 = vmax.f32 %v737_v45, 0.0  ;;  %v533_v59 = vadd.f32 %v3648_v54, %v443_v52 }
 0x190   :  { %v3184_v60 = vpop.eup %3183  ;;  %v742_v39 = vmul.f32 -0.5, %v740_v51  ;;  %v538_v61 = vsub.f32 %v534_v55, %v536_v50 }
 0x191   :  { %v361_v0 = vadd.f32 0.0001, %v3184_v60  ;;  %v741_v12 = vmul.f32 -0.5, %v739_v58  ;;  %v537_v1 = vsub.f32 %v533_v59, %v535_v57  ;;  %v835_v2 = vpop.xlane.xlu1 %834 }
 0x192   :  { %v744_v3 = vmul.f32 4.0, %v742_v39  ;;  %v540_v63 = vmax.f32 %v538_v61, 0.0  ;;  %v837_v8 = vadd.f32 %v3646_v53, %v835_v2  ;;  %v832_v9 = vpop.xlane.xlu0 %831  ;;  %v4423_v2 = vmov %v3672_v6 }
 0x193   :  { %v3716_v13 = vsel %vm3615_vm6, %v361_v0, %v3184_v60   ;;  %v743_v22 = vmul.f32 4.0, %v741_v12  ;;  %v539_v23 = vmax.f32 %v537_v1, 0.0  ;;  %v836_v46 = vadd.f32 %v832_v9, %v3648_v54 }
 0x194   :  { %4412 = vst [vmem:[#allocation15_spill] sm:$0xff] %v3716_v13  ;;  %v3186_v17 = vpop.eup %3185  ;;  %v747_v24 = vmul.f32 1.442695, %v744_v3  ;;  %v542_v25 = vmul.f32 -0.5, %v540_v63  ;;  %v841_v26 = vsub.f32 %v837_v8, %v839_v62  ;;  %v3739_v60 = vmov 0.0  }
 0x195   :  { %v360_v27 = vadd.f32 0.0001, %v3186_v17  ;;  %v745_v28 = vmul.f32 1.442695, %v743_v22  ;;  %v541_v18 = vmul.f32 -0.5, %v539_v23  ;;  %v840_v29 = vsub.f32 %v836_v46, %v838_v40 }
 0x196   :  { %3187 = vpow2.f32 %v747_v24  ;;  %v544_v30 = vmul.f32 4.0, %v542_v25  ;;  %v843_v53 = vmax.f32 %v841_v26, 0.0  ;;  %v3763_v62 = vmov 0.0  }
 0x197   :  { %v3721_v47 = vsel %vm3621_vm7, %v360_v27, %v3186_v17   ;;  %3189 = vpow2.f32 %v745_v28  ;;  %v543_v31 = vmul.f32 4.0, %v541_v18  ;;  %v842_v32 = vmax.f32 %v840_v29, 0.0 }
 0x198   :  { %4413 = vst [vmem:[#allocation16_spill] sm:$0xff] %v3721_v47  ;;  %v547_v33 = vmul.f32 1.442695, %v544_v30  ;;  %v845_v54 = vmul.f32 -0.5, %v843_v53  ;;  %v4421_v0 = vmov %v3716_v13  ;;  %v4422_v12 = vmov %v3721_v47 }
 0x199   :  { %v545_v34 = vmul.f32 1.442695, %v543_v31  ;;  %v844_v35 = vmul.f32 -0.5, %v842_v32  ;;  %v3771_v1 = vmov 0.0   ;;  %v4424_v40 = vmov %v3674_v7 }
 0x19a   :  { %3191 = vpow2.f32 %v547_v33  ;;  %v847_v36 = vmul.f32 4.0, %v845_v54  ;;  %v3779_v3 = vmov 0.0   ;;  %v4425_v63 = vmov %v3701_v41 }
 0x19b   :  { %3193 = vpow2.f32 %v545_v34  ;;  %v846_v42 = vmul.f32 4.0, %v844_v35  ;;  %v4426_v8 = vmov %v3707_v56 }
 0x19c   :  { %v850_v43 = vmul.f32 1.442695, %v847_v36 }
 0x19d   :  { %v848_v44 = vmul.f32 1.442695, %v846_v42 }
 0x19e   :  { %3195 = vpow2.f32 %v850_v43 }
 0x19f   :  { %3197 = vpow2.f32 %v848_v44 }
 0x1a0   :  { %v3188_v48 = vpop.eup %3187 }
 0x1a1   :  { %v3190_v45 = vpop.eup %3189  ;;  %v750_v49 = vadd.f32 0.0001, %v3188_v48 }
 0x1a2   :  { %v749_v50 = vadd.f32 0.0001, %v3190_v45 }
 0x1a3   :  { %v3725_v51 = vsel %vm3615_vm6, %v750_v49, %v3188_v48  }
 0x1a4   :  { %4414 = vst [vmem:[#allocation17_spill] sm:$0xff] %v3725_v51  ;;  %v3727_v55 = vpop.eup %3191  ;;  %v3731_v52 = vsel %vm3621_vm7, %v749_v50, %v3190_v45   ;;  %v4419_v39 = vmov %v3725_v51 }
 0x1a5   :  { %4415 = vst [vmem:[#allocation18_spill] sm:$0xff] %v3727_v55  ;;  %4416 = vst [vmem:[#allocation19_spill] sm:$0xff] %v3731_v52  ;;  %v3733_v57 = vpop.eup %3193  ;;  %v4420_v61 = vmov %v3731_v52 }
 0x1a8   :  { %v3735_v58 = vpop.eup %3195 }
 0x1a9   :  { %4417 = vst [vmem:[#allocation20_spill] sm:$0xff] %v3735_v58  ;;  %v3737_v59 = vpop.eup %3197 }
 0x1aa   :  { %4418 = vst [vmem:[#allocation21_spill] sm:$0xff] %v3737_v59 }
 0x1ab LB: > { %v962_v9 = vstv %s3397_s5  ;;  %v4427_v10 = vld [vmem:[#allocation8_spill] sm:$0xff]  ;;  %v4430_v11 = vld [vmem:[#allocation9_spill] sm:$0xff]  ;;  %v4433_v14 = vld [vmem:[#allocation10_spill] sm:$0xff]  ;;  %s943_s5 = sadd.s32 1, %s3397_s5   ;;  %s3397_s5 = sphi %s3787_s5, %s943_s5   ;;  %v3393_v8 = vphi %v4426_v8, %v4472_v8   ;;  %v3389_v63 = vphi %v4425_v63, %v4471_v63   ;;  %v3385_v3 = vphi %v3779_v3, %v4470_v3   ;;  %v3381_v40 = vphi %v4424_v40, %v4469_v40   ;;  %v3377_v2 = vphi %v4423_v2, %v4468_v2   ;;  %v3373_v1 = vphi %v3771_v1, %v4467_v1   ;;  %v3369_v12 = vphi %v4422_v12, %v4466_v12   ;;  %v3365_v0 = vphi %v4421_v0, %v4465_v0   ;;  %v3361_v62 = vphi %v3763_v62, %v4464_v62   ;;  %v3357_v61 = vphi %v4420_v61, %v4463_v61   ;;  %v3353_v39 = vphi %v4419_v39, %v4462_v39   ;;  %v3349_v38 = vphi %v3755_v38, %v4461_v38   ;;  %v3345_v16 = vphi %v3684_v16, %v4460_v16   ;;  %v3341_v15 = vphi %v3682_v15, %v4459_v15   ;;  %v3337_v37 = vphi %v3747_v37, %v4458_v37   ;;  %v3333_v21 = vphi %v3692_v21, %v4457_v21   ;;  %v3329_v19 = vphi %v3690_v19, %v4456_v19   ;;  %v3325_v60 = vphi %v3739_v60, %v4455_v60  }
 0x1ac   : > { %vm3848_vm8 = vcmp.eq.s32.totalorder %v4427_v10, %v962_v9  ;;  %vm3853_vm9 = vcmp.eq.s32.totalorder %v4430_v11, %v962_v9  ;;  %vm3858_vm10 = vcmp.eq.s32.totalorder %v4433_v14, %v962_v9  ;;  %p4181_p0 = scmp.ge.s32.totalorder %s943_s5, 16  }
 0x1ad   : > { %vm3866_vm11 = vmand %vm3848_vm8, %vm3853_vm9  ;;  %2828 = vmatprep.mubr.msk.f32.mxu1 (%p4181_p0), %vm124_vm2, %v3733_v57  ;;  %v4473_v46 = vld [vmem:[#allocation13_spill] sm:$0xff] (%p4181_p0)  ;;  %v4474_v26 = vld [vmem:[#allocation14_spill] sm:$0xff] (%p4181_p0)  ;;  %vm1739_vm13 = vcmask (%p4181_p0), 7168   ;;  %vm2525_vm14 = vcmask (%p4181_p0), 0  }
 0x1ae   : > { %v968_v24 = vsel %vm3866_vm11, %v3393_v8, 0.0  ;;  %v1021_v25 = vsel %vm3866_vm11, %v3381_v40, 0.0  ;;  %vm3880_vm12 = vmand %vm3858_vm10, %vm3853_vm9  ;;  %v1074_v31 = vsel %vm3866_vm11, %v3369_v12, 0.0  ;;  %v1127_v34 = vsel %vm3866_vm11, %v3357_v61, 0.0 }
 0x1af   : > { %v970_v27 = vsel %vm124_vm2, %v968_v24, 0.0  ;;  %v1023_v28 = vsel %vm124_vm2, %v1021_v25, 0.0  ;;  %v969_v18 = vsel %vm3880_vm12, %v3389_v63, 0.0  ;;  %v1022_v29 = vsel %vm3880_vm12, %v3377_v2, 0.0 }
 0x1b0   : > { %971 = vadd.xlane.f32.xlu0 %v970_v27  ;;  %1024 = vadd.xlane.f32.xlu1 %v1023_v28  ;;  %v973_v30 = vsel %vm124_vm2, %v969_v18, 0.0  ;;  %v1026_v53 = vsel %vm124_vm2, %v1022_v29, 0.0  ;;  %v1075_v32 = vsel %vm3880_vm12, %v3365_v0, 0.0  ;;  %v1076_v33 = vsel %vm124_vm2, %v1074_v31, 0.0 }
 0x1b1   : > { %v1079_v54 = vsel %vm124_vm2, %v1075_v32, 0.0  ;;  %v1128_v35 = vsel %vm3880_vm12, %v3353_v39, 0.0  ;;  %v1129_v36 = vsel %vm124_vm2, %v1127_v34, 0.0  ;;  %v1180_v43 = vsel %vm3866_vm11, %v3345_v16, 0.0 }
 0x1b2   : > { %v1132_v42 = vsel %vm124_vm2, %v1128_v35, 0.0  ;;  %v1181_v44 = vsel %vm3880_vm12, %v3341_v15, 0.0  ;;  %v1182_v48 = vsel %vm124_vm2, %v1180_v43, 0.0  ;;  %v1233_v49 = vsel %vm3866_vm11, %v3333_v21, 0.0 }
 0x1b3   : > { %v1185_v45 = vsel %vm124_vm2, %v1181_v44, 0.0  ;;  %v1234_v50 = vsel %vm3880_vm12, %v3329_v19, 0.0  ;;  %v1235_v9 = vsel %vm124_vm2, %v1233_v49, 0.0  ;;  %v983_v25 = vsel %vm3853_vm9, %v3393_v8, 0.0 }
 0x1b4   : > { %974 = vadd.xlane.f32.xlu0 %v973_v30  ;;  %1027 = vadd.xlane.f32.xlu1 %v1026_v53  ;;  %v1238_v24 = vsel %vm124_vm2, %v1234_v50, 0.0  ;;  %v984_v27 = vsel %vm3853_vm9, %v3389_v63, 0.0  ;;  %v985_v28 = vsel %vm124_vm2, %v983_v25, 0.0  ;;  %v1036_v29 = vsel %vm3853_vm9, %v3381_v40, 0.0 }
 0x1b5   : > { %v988_v18 = vsel %vm124_vm2, %v984_v27, 0.0  ;;  %v1037_v30 = vsel %vm3853_vm9, %v3377_v2, 0.0  ;;  %v1038_v53 = vsel %vm124_vm2, %v1036_v29, 0.0  ;;  %v1089_v32 = vsel %vm3853_vm9, %v3369_v12, 0.0 }
 0x1b6   : > { %v1041_v31 = vsel %vm124_vm2, %v1037_v30, 0.0  ;;  %v1142_v35 = vsel %vm3853_vm9, %v3357_v61, 0.0  ;;  %v1195_v44 = vsel %vm3853_vm9, %v3345_v16, 0.0  ;;  %v1248_v50 = vsel %vm3853_vm9, %v3333_v21, 0.0 }
 0x1b7   : > { %v991_v27 = vsel %vm3848_vm8, %v3393_v8, 0.0  ;;  %v1045_v29 = vsel %vm3858_vm10, %v3377_v2, 0.0  ;;  %v1298_v17 = vsub.f32 (%p4181_p0), %v4473_v46, %v3707_v56 }
 0x1b8   : > { %1077 = vadd.xlane.f32.xlu0 %v1076_v33  ;;  %1080 = vadd.xlane.f32.xlu1 %v1079_v54  ;;  %v1090_v33 = vsel %vm3853_vm9, %v3365_v0, 0.0  ;;  %v1091_v54 = vsel %vm124_vm2, %v1089_v32, 0.0  ;;  %v993_v30 = vsel %vm124_vm2, %v991_v27, 0.0  ;;  %v1047_v32 = vsel %vm124_vm2, %v1045_v29, 0.0 }
 0x1b9   : > { %v1094_v34 = vsel %vm124_vm2, %v1090_v33, 0.0  ;;  %v1257_v29 = vsel %vm3858_vm10, %v3329_v19, 0.0 }
 0x1bc   : > { %1130 = vadd.xlane.f32.xlu0 %v1129_v36  ;;  %1133 = vadd.xlane.f32.xlu1 %v1132_v42  ;;  %v1143_v36 = vsel %vm3853_vm9, %v3353_v39, 0.0  ;;  %v1144_v42 = vsel %vm124_vm2, %v1142_v35, 0.0 }
 0x1bd   : > { %v1147_v43 = vsel %vm124_vm2, %v1143_v36, 0.0  ;;  %v1150_v36 = vsel %vm3848_vm8, %v3357_v61, 0.0 }
 0x1c0   : > { %1183 = vadd.xlane.f32.xlu0 %v1182_v48  ;;  %1186 = vadd.xlane.f32.xlu1 %v1185_v45  ;;  %v1196_v48 = vsel %vm3853_vm9, %v3341_v15, 0.0  ;;  %v1197_v45 = vsel %vm124_vm2, %v1195_v44, 0.0 }
 0x1c1   : > { %v1200_v49 = vsel %vm124_vm2, %v1196_v48, 0.0 }
 0x1c4   : > { %1236 = vadd.xlane.f32.xlu0 %v1235_v9  ;;  %1239 = vadd.xlane.f32.xlu1 %v1238_v24  ;;  %v1249_v9 = vsel %vm3853_vm9, %v3329_v19, 0.0  ;;  %v1250_v24 = vsel %vm124_vm2, %v1248_v50, 0.0 }
 0x1c5   : > { %v1253_v25 = vsel %vm124_vm2, %v1249_v9, 0.0 }
 0x1c8   : > { %986 = vadd.xlane.f32.xlu0 %v985_v28  ;;  %989 = vadd.xlane.f32.xlu1 %v988_v18  ;;  %v992_v28 = vsel %vm3858_vm10, %v3389_v63, 0.0  ;;  %v1044_v18 = vsel %vm3848_vm8, %v3381_v40, 0.0 }
 0x1cc   : > { %1039 = vadd.xlane.f32.xlu0 %v1038_v53  ;;  %1042 = vadd.xlane.f32.xlu1 %v1041_v31  ;;  %v994_v53 = vsel %vm124_vm2, %v992_v28, 0.0  ;;  %v1046_v31 = vsel %vm124_vm2, %v1044_v18, 0.0  ;;  %v1256_v18 = vsel %vm3848_vm8, %v3333_v21, 0.0 }
 0x1cd   : > { %v995_v33 = vadd.f32 %v994_v53, %v993_v30  ;;  %v1048_v35 = vadd.f32 %v1047_v32, %v1046_v31 }
 0x1cf   : > { %v996_v48 = vrot.slane %v995_v33, 4  ;;  %v1049_v27 = vrot.slane %v1048_v35, 4 }
 0x1d0   : > { %1092 = vadd.xlane.f32.xlu0 %v1091_v54  ;;  %1095 = vadd.xlane.f32.xlu1 %v1094_v34  ;;  %v1097_v54 = vsel %vm3848_vm8, %v3369_v12, 0.0  ;;  %v1098_v34 = vsel %vm3858_vm10, %v3365_v0, 0.0 }
 0x1d1   : > { %v1100_v44 = vsel %vm124_vm2, %v1098_v34, 0.0  ;;  %v997_v34 = vadd.f32 %v996_v48, %v995_v33  ;;  %v1050_v14 = vadd.f32 %v1049_v27, %v1048_v35 }
 0x1d3   : > { %v1051_v48 = vrot.slane %v1050_v14, 2 }
 0x1d4   : > { %1145 = vadd.xlane.f32.xlu0 %v1144_v42  ;;  %1148 = vadd.xlane.f32.xlu1 %v1147_v43  ;;  %v1151_v42 = vsel %vm3858_vm10, %v3353_v39, 0.0  ;;  %v1099_v43 = vsel %vm124_vm2, %v1097_v54, 0.0 }
 0x1d5   : > { %v1101_v28 = vadd.f32 %v1100_v44, %v1099_v43  ;;  %v1052_v55 = vadd.f32 %v1051_v48, %v1050_v14 }
 0x1d7   : > { %v1102_v10 = vrot.slane %v1101_v28, 4 }
 0x1d8   : > { %1198 = vadd.xlane.f32.xlu0 %v1197_v45  ;;  %1201 = vadd.xlane.f32.xlu1 %v1200_v49  ;;  %v1203_v45 = vsel %vm3848_vm8, %v3345_v16, 0.0  ;;  %v1204_v49 = vsel %vm3858_vm10, %v3341_v15, 0.0 }
 0x1d9   : > { %v1205_v30 = vsel %vm124_vm2, %v1203_v45, 0.0  ;;  %v1206_v53 = vsel %vm124_vm2, %v1204_v49, 0.0  ;;  %v998_v49 = vrot.slane %v997_v34, 2 }
 0x1da   : > { %v1207_v11 = vadd.f32 %v1206_v53, %v1205_v30 }
 0x1db   : > { %v999_v35 = vadd.f32 %v998_v49, %v997_v34 }
 0x1dc   : > { %1251 = vadd.xlane.f32.xlu0 %v1250_v24  ;;  %1254 = vadd.xlane.f32.xlu1 %v1253_v25  ;;  %v1152_v24 = vsel %vm124_vm2, %v1150_v36, 0.0  ;;  %v1153_v25 = vsel %vm124_vm2, %v1151_v42, 0.0  ;;  %v1258_v36 = vsel %vm124_vm2, %v1256_v18, 0.0  ;;  %v1259_v42 = vsel %vm124_vm2, %v1257_v29, 0.0 }
 0x1dd   : > { %v1154_v31 = vadd.f32 %v1153_v25, %v1152_v24  ;;  %v1260_v13 = vadd.f32 %v1259_v42, %v1258_v36  ;;  %v1208_v33 = vrot.slane %v1207_v11, 4  ;;  %v1103_v18 = vadd.f32 %v1102_v10, %v1101_v28 }
 0x1df   : > { %v1155_v47 = vrot.slane %v1154_v31, 4  ;;  %v1104_v5 = vrot.slane %v1103_v18, 2 }
 0x1e1   : > { %v1156_v27 = vadd.f32 %v1155_v47, %v1154_v31  ;;  %v1053_v31 = vrot.slane %v1052_v55, 1 }
 0x1e3   : > { %v1157_v4 = vrot.slane %v1156_v27, 2 }
 0x1e5   : > { %v1158_v48 = vadd.f32 %v1157_v4, %v1156_v27 }
 0x23d   : > { %v972_v50 = vpop.xlane.xlu0 %971  ;;  %v1025_v9 = vpop.xlane.xlu1 %1024 }
 0x241   : > { %v975_v32 = vpop.xlane.xlu0 %974  ;;  %v1028_v54 = vpop.xlane.xlu1 %1027 }
 0x242   : > { %v976_v43 = vadd.f32 %v975_v32, %v972_v50  ;;  %v1029_v44 = vadd.f32 %v1028_v54, %v1025_v9  ;;  %v1261_v9 = vrot.slane %v1260_v13, 4 }
 0x244   : > { %v977_v52 = vrot.slane %v976_v43, 4  ;;  %v1030_v51 = vrot.slane %v1029_v44, 4  ;;  %v1262_v6 = vadd.f32 %v1261_v9, %v1260_v13 }
 0x245   : > { %v1078_v45 = vpop.xlane.xlu0 %1077  ;;  %v1081_v58 = vpop.xlane.xlu1 %1080 }
 0x246   : > { %v978_v24 = vadd.f32 %v977_v52, %v976_v43  ;;  %v1031_v25 = vadd.f32 %v1030_v51, %v1029_v44  ;;  %v1082_v59 = vadd.f32 %v1081_v58, %v1078_v45  ;;  %v1209_v52 = vadd.f32 %v1208_v33, %v1207_v11 }
 0x247   : > { %v1000_v45 = vrot.slane %v999_v35, 1  ;;  %v1105_v11 = vadd.f32 %v1104_v5, %v1103_v18 }
 0x248   : > { %v979_v20 = vrot.slane %v978_v24, 2  ;;  %v1032_v29 = vrot.slane %v1031_v25, 2  ;;  %v1083_v50 = vrot.slane %v1082_v59, 4 }
 0x249   : > { %v1131_v32 = vpop.xlane.xlu0 %1130  ;;  %v1134_v30 = vpop.xlane.xlu1 %1133 }
 0x24a   : > { %v980_v53 = vadd.f32 %v979_v20, %v978_v24  ;;  %v1033_v54 = vadd.f32 %v1032_v29, %v1031_v25  ;;  %v1084_v36 = vadd.f32 %v1083_v50, %v1082_v59  ;;  %v1135_v42 = vadd.f32 %v1134_v30, %v1131_v32 }
 0x24b   : > { %v1210_v59 = vrot.slane %v1209_v52, 2  ;;  %v1263_v29 = vrot.slane %v1262_v6, 2  ;;  %v1001_v30 = vadd.f32 %v1000_v45, %v999_v35 }
 0x24c   : > { %v981_v51 = vrot.slane %v980_v53, 1  ;;  %v1034_v58 = vrot.slane %v1033_v54, 1  ;;  %v1085_v43 = vrot.slane %v1084_v36, 2  ;;  %v1136_v44 = vrot.slane %v1135_v42, 4 }
 0x24d   : > { %v1184_v10 = vpop.xlane.xlu0 %1183  ;;  %v1187_v28 = vpop.xlane.xlu1 %1186 }
 0x24e   : > { %v982_v41 = vadd.f32 %v981_v51, %v980_v53  ;;  %v1035_v7 = vadd.f32 %v1034_v58, %v1033_v54  ;;  %v1086_v34 = vadd.f32 %v1085_v43, %v1084_v36  ;;  %v1137_v47 = vadd.f32 %v1136_v44, %v1135_v42 }
 0x24f   : > { %v1188_v20 = vadd.f32 %v1187_v28, %v1184_v10  ;;  %v1211_v53 = vadd.f32 %v1210_v59, %v1209_v52  ;;  %v1054_v42 = vadd.f32 %v1053_v31, %v1052_v55  ;;  %v1106_v51 = vrot.slane %v1105_v11, 1 }
 0x250   : > { %3199 = vrcp.f32 %v982_v41  ;;  %v1087_v14 = vrot.slane %v1086_v34, 1  ;;  %v1138_v49 = vrot.slane %v1137_v47, 2  ;;  %v1264_v58 = vadd.f32 %v1263_v29, %v1262_v6 }
 0x251   : > { %3201 = vlog2.f32 %v982_v41  ;;  %v1189_v24 = vrot.slane %v1188_v20, 4  ;;  %v1237_v25 = vpop.xlane.xlu0 %1236  ;;  %v1240_v33 = vpop.xlane.xlu1 %1239  ;;  %v1159_v43 = vrot.slane %v1158_v48, 1  ;;  %v1212_v10 = vrot.slane %v1211_v53, 1 }
 0x252   : > { %3203 = vrcp.f32 %v1035_v7  ;;  %v1088_v50 = vadd.f32 %v1087_v14, %v1086_v34  ;;  %v1139_v13 = vadd.f32 %v1138_v49, %v1137_v47  ;;  %v1241_v9 = vadd.f32 %v1240_v33, %v1237_v25 }
 0x253   : > { %3205 = vlog2.f32 %v1035_v7  ;;  %v1190_v32 = vadd.f32 %v1189_v24, %v1188_v20  ;;  %v4022_v7 = vadd.f32 %v1106_v51, %v1105_v11  ;;  %v1265_v55 = vrot.slane %v1264_v58, 1 }
 0x254   : > { %v1140_v54 = vrot.slane %v1139_v13, 1  ;;  %v1242_v36 = vrot.slane %v1241_v9, 4  ;;  %3207 = vlog2.f32 %v1088_v50  ;;  %v4024_v20 = vadd.f32 %v1159_v43, %v1158_v48 }
 0x255   : > { %v1191_v5 = vrot.slane %v1190_v32, 2  ;;  %v987_v41 = vpop.xlane.xlu0 %986  ;;  %v990_v18 = vpop.xlane.xlu1 %989  ;;  %3209 = vrcp.f32 %v1088_v50  ;;  %v4026_v14 = vadd.f32 %v1212_v10, %v1211_v53 }
 0x256   : > { %v1141_v4 = vadd.f32 %v1140_v54, %v1139_v13  ;;  %v1243_v27 = vadd.f32 %v1242_v36, %v1241_v9 }
 0x257   : > { %v1192_v44 = vadd.f32 %v1191_v5, %v1190_v32  ;;  %v4030_v32 = vadd.f32 %v1265_v55, %v1264_v58 }
 0x258   : > { %v1244_v28 = vrot.slane %v1243_v27, 2  ;;  %3211 = vlog2.f32 %v1141_v4 }
 0x259   : > { %v1193_v35 = vrot.slane %v1192_v44, 1  ;;  %v1040_v52 = vpop.xlane.xlu0 %1039  ;;  %v1043_v45 = vpop.xlane.xlu1 %1042  ;;  %3213 = vrcp.f32 %v1141_v4 }
 0x25a   : > { %v3200_v34 = vpop.eup %3199  ;;  %v1245_v47 = vadd.f32 %v1244_v28, %v1243_v27 }
 0x25b   : > { %v3202_v31 = vpop.eup %3201  ;;  %v1194_v6 = vadd.f32 %v1193_v35, %v1192_v44  ;;  %v1004_v59 = vmul.f32 %v3200_v34, %v987_v41  ;;  %v1005_v25 = vmul.f32 %v3200_v34, %v990_v18  ;;  %v1012_v29 = vmul.f32 %v3200_v34, %v1001_v30 }
 0x25c   : > { %v4028_v49 = vpop.eup %3203  ;;  %v1019_v24 = vmul.f32 0.6931472, %v3202_v31  ;;  %v1246_v11 = vrot.slane %v1245_v47, 1  ;;  %v1015_v43 = vsub.f32 0.0, %v3200_v34 }
 0x25d   : > { %v3206_v33 = vpop.eup %3205  ;;  %3215 = vrcp.f32 %v1194_v6  ;;  %v1006_v50 = vmul.f32 %v1004_v59, %v1001_v30  ;;  %v1093_v13 = vpop.xlane.xlu0 %1092  ;;  %v1007_v5 = vmul.f32 %v1005_v25, %v1001_v30  ;;  %v1057_v41 = vmul.f32 %v4028_v49, %v1040_v52 }
 0x25e   : > { %v1096_v9 = vpop.xlane.xlu1 %1095  ;;  %v4033_v3 = vadd.f32 %v3385_v3, %v1019_v24   ;;  %v1072_v54 = vmul.f32 0.6931472, %v3206_v33  ;;  %3217 = vlog2.f32 %v1194_v6  ;;  %v1247_v53 = vadd.f32 %v1246_v11, %v1245_v47  ;;  %v3208_v36 = vpop.eup %3207 }
 0x25f   : > { %v1008_v51 = vsub.f32 %v3393_v8, %v1006_v50  ;;  %v1058_v18 = vmul.f32 %v4028_v49, %v1043_v45  ;;  %v4038_v4 = vpop.eup %3209  ;;  %v1125_v27 = vmul.f32 0.6931472, %v3208_v36  ;;  %v1009_v44 = vsub.f32 %v3389_v63, %v1007_v5 }
 0x260   : > { %v4440_v48 = vmov %v4033_v3  ;;  %v4041_v1 = vadd.f32 %v3373_v1, %v1072_v54   ;;  %3219 = vrcp.f32 %v1247_v53  ;;  %v1059_v8 = vmul.f32 %v1057_v41, %v1054_v42 }
 0x261   : > { %3221 = vlog2.f32 %v1247_v53  ;;  %v1010_v3 = vsel %vm3853_vm9, %v1004_v59, %v1008_v51  ;;  %v1146_v30 = vpop.xlane.xlu0 %1145  ;;  %v4047_v62 = vadd.f32 %v3361_v62, %v1125_v27   ;;  %v1060_v52 = vmul.f32 %v1058_v18, %v1054_v42 }
 0x262   : > { %v4441_v58 = vmov %v4041_v1  ;;  %v1149_v10 = vpop.xlane.xlu1 %1148  ;;  %v1013_v35 = vsel %vm3848_vm8, %v1012_v29, %v1010_v3  ;;  %v1065_v1 = vmul.f32 %v4028_v49, %v1054_v42  ;;  %v3212_v45 = vpop.eup %3211  ;;  %v1011_v63 = vsel %vm3853_vm9, %v1005_v25, %v1009_v44 }
 0x263   : > { %v4442_v28 = vmov %v4047_v62  ;;  %v4054_v55 = vsel %vm3866_vm11, %v1015_v43, %v1013_v35   ;;  %v1061_v34 = vsub.f32 %v3381_v40, %v1059_v8  ;;  %v1110_v47 = vmul.f32 %v4038_v4, %v1093_v13  ;;  %v3214_v59 = vpop.eup %3213 }
 0x264   : > { %v1178_v31 = vmul.f32 0.6931472, %v3212_v45  ;;  %v1014_v62 = vsel %vm3858_vm10, %v1012_v29, %v1011_v63  ;;  %v1062_v6 = vsub.f32 %v3377_v2, %v1060_v52  ;;  %v1111_v42 = vmul.f32 %v4038_v4, %v1096_v9 }
 0x265   : > { %v4066_v63 = vsel %vm3880_vm12, %v1015_v43, %v1014_v62   ;;  %v1068_v11 = vsub.f32 0.0, %v4028_v49  ;;  %v1063_v40 = vsel %vm3853_vm9, %v1057_v41, %v1061_v34  ;;  %v1112_v25 = vmul.f32 %v1110_v47, %v4022_v7  ;;  %v1199_v33 = vpop.xlane.xlu0 %1198 }
 0x266   : > { %v4443_v24 = vmov %v4066_v63  ;;  %v4073_v38 = vadd.f32 %v3349_v38, %v1178_v31   ;;  %v1066_v2 = vsel %vm3848_vm8, %v1065_v1, %v1063_v40  ;;  %v1064_v50 = vsel %vm3853_vm9, %v1058_v18, %v1062_v6  ;;  %v1202_v36 = vpop.xlane.xlu1 %1201 }
 0x267   : > { %v1113_v13 = vmul.f32 %v1111_v42, %v4022_v7  ;;  %v3216_v9 = vpop.eup %3215  ;;  %v4082_v40 = vsel %vm3866_vm11, %v1068_v11, %v1066_v2   ;;  %v1067_v54 = vsel %vm3858_vm10, %v1065_v1, %v1064_v50  ;;  %v1118_v53 = vmul.f32 %v4038_v4, %v4022_v7 }
 0x268   : > { %v4444_v29 = vmov %v4073_v38  ;;  %v4445_v49 = vmov %v4082_v40  ;;  %v1114_v38 = vsub.f32 %v3369_v12, %v1112_v25  ;;  %v3218_v51 = vpop.eup %3217  ;;  %v4091_v2 = vsel %vm3880_vm12, %v1068_v11, %v1067_v54  }
 0x269   : > { %v4446_v5 = vmov %v4091_v2  ;;  %v1115_v41 = vsub.f32 %v3365_v0, %v1113_v13  ;;  %v1163_v18 = vmul.f32 %v3214_v59, %v1146_v30  ;;  %v1164_v27 = vmul.f32 %v3214_v59, %v1149_v10  ;;  %v1252_v30 = vpop.xlane.xlu0 %1251 }
 0x26a   : > { %v1231_v43 = vmul.f32 0.6931472, %v3218_v51  ;;  %v1121_v3 = vsub.f32 0.0, %v4038_v4  ;;  %v1116_v44 = vsel %vm3853_vm9, %v1110_v47, %v1114_v38  ;;  %v1171_v7 = vmul.f32 %v3214_v59, %v4024_v20  ;;  %v3220_v8 = vpop.eup %3219  ;;  %v1255_v11 = vpop.xlane.xlu1 %1254 }
 0x26b   : > { %v1119_v12 = vsel %vm3848_vm8, %v1118_v53, %v1116_v44  ;;  %v1117_v35 = vsel %vm3853_vm9, %v1111_v42, %v1115_v41  ;;  %v1165_v1 = vmul.f32 %v1163_v18, %v4024_v20  ;;  %v1166_v0 = vmul.f32 %v1164_v27, %v4024_v20  ;;  %v3222_v10 = vpop.eup %3221 }
 0x26c   : > { %v4105_v37 = vadd.f32 %v3337_v37, %v1231_v43   ;;  %v4109_v12 = vsel %vm3866_vm11, %v1121_v3, %v1119_v12   ;;  %v1120_v45 = vsel %vm3858_vm10, %v1118_v53, %v1117_v35  ;;  %v1216_v63 = vmul.f32 %v3216_v9, %v1199_v33 }
 0x26d   : > { %v4448_v52 = vmov %v4109_v12  ;;  %v1284_v34 = vmul.f32 0.6931472, %v3222_v10  ;;  %v4115_v47 = vsel %vm3880_vm12, %v1121_v3, %v1120_v45   ;;  %v1167_v20 = vsub.f32 %v3357_v61, %v1165_v1 }
 0x26e   : > { %v4447_v4 = vmov %v4105_v37  ;;  %v1168_v31 = vsub.f32 %v3353_v39, %v1166_v0  ;;  %v1174_v62 = vsub.f32 0.0, %v3214_v59  ;;  %v1218_v37 = vmul.f32 %v1216_v63, %v4026_v14 }
 0x26f   : > { %v1217_v6 = vmul.f32 %v3216_v9, %v1202_v36  ;;  %v1269_v42 = vmul.f32 %v3220_v8, %v1252_v30  ;;  %v4121_v60 = vadd.f32 %v3325_v60, %v1284_v34   ;;  %v1169_v40 = vsel %vm3853_vm9, %v1163_v18, %v1167_v20  ;;  %v4476_v34 = vld [vmem:[#allocation6_spill] sm:$0xff] (%p4181_p0)  ;;  %v4477_v20 = vld [vmem:[#allocation7_spill] sm:$0xff] (%p4181_p0) }
 0x270   : > { %v1170_v33 = vsel %vm3853_vm9, %v1164_v27, %v1168_v31  ;;  %v1224_v2 = vmul.f32 %v3216_v9, %v4026_v14  ;;  %v1172_v39 = vsel %vm3848_vm8, %v1171_v7, %v1169_v40  ;;  %v1220_v59 = vsub.f32 %v3345_v16, %v1218_v37 }
 0x271   : > { %v4449_v25 = vmov %v4121_v60  ;;  %v1173_v61 = vsel %vm3858_vm10, %v1171_v7, %v1170_v33  ;;  %v1219_v50 = vmul.f32 %v1217_v6, %v4026_v14  ;;  %v4136_v60 = vsel %vm3866_vm11, %v1174_v62, %v1172_v39  }
 0x272   : > { %v4450_v13 = vmov %v4136_v60  ;;  %v4140_v39 = vsel %vm3880_vm12, %v1174_v62, %v1173_v61   ;;  %v1271_v53 = vmul.f32 %v1269_v42, %v4030_v32  ;;  %v1270_v38 = vmul.f32 %v3220_v8, %v1255_v11 }
 0x273   : > { %v4451_v54 = vmov %v4140_v39  ;;  %v1227_v36 = vsub.f32 0.0, %v3216_v9  ;;  %v1222_v51 = vsel %vm3853_vm9, %v1216_v63, %v1220_v59  ;;  %v1221_v41 = vsub.f32 %v3341_v15, %v1219_v50  ;;  %v4480_v50 = vld [vmem:[#allocation21_spill] sm:$0xff] (%p4181_p0) }
 0x274   : > { %v1225_v16 = vsel %vm3848_vm8, %v1224_v2, %v1222_v51  ;;  %v1273_v14 = vsub.f32 %v3333_v21, %v1271_v53  ;;  %v1272_v18 = vmul.f32 %v1270_v38, %v4030_v32  ;;  %v1277_v9 = vmul.f32 %v3220_v8, %v4030_v32  ;;  %v4481_v53 = vld [vmem:[#allocation20_spill] sm:$0xff] (%p4181_p0) }
 0x275   : > { %v4152_v16 = vsel %vm3866_vm11, %v1227_v36, %v1225_v16   ;;  %v1223_v43 = vsel %vm3853_vm9, %v1217_v6, %v1221_v41  ;;  %v1280_v44 = vsub.f32 0.0, %v3220_v8  ;;  %v4455_v60 = vmov %v4449_v25  ;;  %v4482_v41 = vld [vmem:[#allocation15_spill] sm:$0xff] (%p4181_p0) }
 0x276   : > { %v4452_v27 = vmov %v4152_v16  ;;  %v1226_v3 = vsel %vm3858_vm10, %v1224_v2, %v1223_v43  ;;  %v1275_v15 = vsel %vm3853_vm9, %v1269_v42, %v1273_v14  ;;  %v1274_v21 = vsub.f32 %v3329_v19, %v1272_v18  ;;  %942 = sbr.rel (!%p4181_p0) target bundleno = 427 (0x1ab), region = 58 }
 0x277   : > { %v4164_v7 = vsel %vm3880_vm12, %v1227_v36, %v1226_v3   ;;  %v1278_v12 = vsel %vm3848_vm8, %v1277_v9, %v1275_v15  ;;  %v4458_v37 = vmov %v4447_v4  ;;  %v4460_v16 = vmov %v4452_v27 }
 0x278   : > { %v4170_v35 = vsel %vm3866_vm11, %v1280_v44, %v1278_v12   ;;  %v1276_v32 = vsel %vm3853_vm9, %v1270_v38, %v1274_v21  ;;  %v4459_v15 = vmov %v4164_v7  ;;  %v4461_v38 = vmov %v4444_v29  ;;  %v1620_v37 = vld [vmem:[%s4376_s4] sm:$0xff] (%p4181_p0) }
 0x279   : > { %v1279_v1 = vsel %vm3858_vm10, %v1277_v9, %v1276_v32  ;;  %v4457_v21 = vmov %v4170_v35  ;;  %v4462_v39 = vmov %v4451_v54  ;;  %v4463_v61 = vmov %v4450_v13 }
 0x27a   : > { %v4178_v19 = vsel %vm3880_vm12, %v1280_v44, %v1279_v1   ;;  %v4464_v62 = vmov %v4442_v28  ;;  %v4465_v0 = vmov %v4115_v47  ;;  %v4466_v12 = vmov %v4448_v52 }
 0x27b   : > { %v4453_v30 = vmov %v4178_v19  ;;  %v4467_v1 = vmov %v4441_v58  ;;  %v4468_v2 = vmov %v4446_v5  ;;  %v4469_v40 = vmov %v4445_v49  ;;  %v1621_v62 = vld [vmem:[%s4376_s4 + $0x8] sm:$0xff] (%p4181_p0) }
 0x27c   : > { %v4456_v19 = vmov %v4453_v30  ;;  %v4470_v3 = vmov %v4440_v48  ;;  %v4471_v63 = vmov %v4443_v24  ;;  %v4472_v8 = vmov %v4054_v55 }
 0x27d   :  { %v1286_v22 = vsub.f32 0.0, %v4054_v55  ;;  %v1287_v23 = vsub.f32 0.0, %v4443_v24  ;;  %v4475_v8 = vld [vmem:[#allocation12_spill] sm:$0xff]  ;;  %v4253_v31 = vpack.c.bf16 %v4477_v20, %v4476_v34  ;;  %v4478_v19 = vld [vmem:[#allocation18_spill] sm:$0xff]  ;;  %v1294_v63 = vsub.f32 0.0, %v4452_v27 }
 0x27e   :  { %v1299_v10 = vsub.f32 %v4475_v8, %v4474_v26  ;;  %v1295_v60 = vsub.f32 0.0, %v4164_v7  ;;  %v1290_v38 = vsub.f32 0.0, %v4448_v52  ;;  %v1291_v36 = vsub.f32 0.0, %v4115_v47  ;;  %v4483_v52 = vld [vmem:[#allocation16_spill] sm:$0xff] }
 0x27f   :  { %v2969_v45 = vpack.c.bf16 %v1287_v23, %v1286_v22  ;;  %v1296_v0 = vsub.f32 0.0, %v4170_v35 }
 0x280   :  { %v2977_v6 = vpack.c.bf16 %v1299_v10, %v1298_v17 }
 0x281   :  { %2970 = vmatprep.subr.bf16.mxu1 %v2969_v45 }
 0x282   :  { %2972 = vmatpush3.bf16.msra.mxu1 %v2969_v45  ;;  %2978 = vmatprep.subr.bf16.mxu0 %v2977_v6 }
 0x283   :  { %2974 = vmatprep.subr.bf16.mxu1 %v4253_v31  ;;  %2980 = vmatpush3.bf16.msra.mxu0 %v2977_v6 }
 0x285   :  { %2829 = vmatmul.mubr.msk.f32.vlgmr.msra.gmra.mrb[8].mxu1 %vm124_vm2, %v4478_v19 }
 0x286   :  { %2976 = vmatpush3.bf16.msra.mxu1 %v4253_v31 }
 0x358   :  { %v2830_v57 = vpop.f32.mrb[8].mxu1 }
 0x359   :  { %v1372_v55 = vpop.f32.mrb[9].mxu1 }
 0x35a   :  { %v2981_v24 = vpack.c.bf16 %v2830_v57, %v1372_v55  ;;  %2835 = vmatprep.mubr.msk.f32.mxu1 %vm124_vm2, %v1372_v55  ;;  %2842 = vmatprep.mubr.msk.f32.mxu0 %vm124_vm2, %v1372_v55 }
 0x35b   :  { %2836 = vmatmul.mubr.msk.f32.vlgmr.msra.gmra.mrb[10].mxu1 %vm124_vm2, %v2830_v57  ;;  %2843 = vmatmul.mubr.msk.f32.vlgmr.msra.gmra.mrb[10].mxu0 %vm124_vm2, %v2830_v57 }
 0x35c   :  { %2983 = vmatprep.subr.msk.bf16.mxu1 %vm3515_vm5, %v2981_v24  ;;  %2856 = vmatprep.mubr.msk.f32.mxu0 %vm124_vm2, %v1294_v63 }
 0x35d   :  { %2986 = vmatpush3.bf16.xpose.msk.msra.mxu1 %vm3515_vm5, %v2981_v24 }
 0x35e   :  { %2996 = vmatprep.subr.bf16.mxu1 %v2969_v45 }
 0x42e   :  { %v2837_v42 = vpop.f32.mrb[10].mxu1  ;;  %v2844_v11 = vpop.f32.mrb[10].mxu0 }
 0x42f   :  { %v1623_v40 = vsub.f32 %v2837_v42, %v1621_v62  ;;  %v1453_v33 = vpop.f32.mrb[11].mxu1  ;;  %v1528_v2 = vpop.f32.mrb[11].mxu0 }
 0x430   :  { %v1622_v39 = vsub.f32 %v1453_v33, %v1620_v37  ;;  %v2991_v61 = vpack.c.bf16 %v2837_v42, %v1453_v33  ;;  %2849 = vmatprep.mubr.msk.f32.mxu1 %vm124_vm2, %v1528_v2 }
 0x431   :  { %2850 = vmatmul.mubr.msk.f32.vlgmr.msra.gmra.mrb[12].mxu1 %vm124_vm2, %v2844_v11 }
 0x432   :  { %2998 = vmatpush3.bf16.msra.mxu1 %v2969_v45  ;;  %v2987_v59 = vpack.c.bf16 %v1623_v40, %v1622_v39  ;;  %2870 = vmatprep.mubr.msk.f32.mxu1 %vm124_vm2, %v4480_v50 }
 0x433   :  { %3004 = vmatprep.subr.bf16.mxu1 %v2977_v6 }
 0x434   :  { %2988 = vmatprep.subr.bf16.mxu0 %v2987_v59 }
 0x435   :  { %2990 = vmatpush3.bf16.msra.mxu0 %v2987_v59  ;;  %2871 = vmatmul.mubr.msk.f32.vlgmr.msra.gmra.mrb[14].mxu1 %vm124_vm2, %v4481_v53 }
 0x436   :  { %2992 = vmatprep.subr.bf16.mxu0 %v2991_v61  ;;  %3006 = vmatpush3.bf16.msra.mxu1 %v2977_v6 }
 0x438   :  { %2857 = vmatmul.mubr.msk.f32.vlgmr.msra.gmra.mrb[12].mxu0 %vm124_vm2, %v1295_v60 }
 0x439   :  { %2994 = vmatpush3.bf16.msra.mxu0 %v2991_v61  ;;  %2863 = vmatprep.mubr.msk.f32.mxu0 %vm124_vm2, %v1290_v38 }
 0x43a   :  { %3000 = vmatprep.subr.bf16.mxu0 %v4253_v31 }
 0x43c   :  { %2864 = vmatmul.mubr.msk.f32.vlgmr.msra.gmra.mrb[14].mxu0 %vm124_vm2, %v1291_v36 }
 0x43d   :  { %3002 = vmatpush3.bf16.msra.mxu0 %v4253_v31 }
 0x504   :  { %v2851_v51 = vpop.f32.mrb[12].mxu1 }
 0x505   :  { %v1619_v16 = vadd.f32 %v2851_v51, %v4482_v41  ;;  %v1609_v14 = vpop.f32.mrb[13].mxu1 }
 0x506   :  { %v1618_v18 = vadd.f32 %v1609_v14, %v4483_v52 }
 0x507   :  { %v1640_v27 = vmul.f32 %v1619_v16, %v1291_v36  ;;  %v1625_v43 = vmul.f32 %v1619_v16, %v1295_v60 }
 0x508   :  { %v2872_v9 = vpop.f32.mrb[14].mxu1  ;;  %v1639_v44 = vmul.f32 %v1618_v18, %v1290_v38  ;;  %v1624_v7 = vmul.f32 %v1618_v18, %v1294_v63 }
 0x509   :  { %v1926_v3 = vpop.f32.mrb[15].mxu1  ;;  %v1644_v47 = vsel %vm124_vm2, %v1640_v27, 0.0  ;;  %v1629_v15 = vsel %vm124_vm2, %v1625_v43, 0.0 }
 0x50a   :  { %v3007_v21 = vpack.c.bf16 %v2872_v9, %v1926_v3  ;;  %1645 = vadd.xlane.f32.xlu1 %v1644_v47  ;;  %1630 = vadd.xlane.f32.xlu0 %v1629_v15  ;;  %v1641_v23 = vsel %vm124_vm2, %v1639_v44, 0.0  ;;  %v1626_v17 = vsel %vm124_vm2, %v1624_v7, 0.0 }
 0x50b   :  { %2877 = vmatprep.mubr.msk.f32.mxu0 %vm124_vm2, %v1926_v3  ;;  %2884 = vmatprep.mubr.msk.f32.mxu1 %vm124_vm2, %v1926_v3  ;;  %v2858_v12 = vpop.f32.mrb[12].mxu0 }
 0x50c   :  { %v1736_v32 = vmul.f32 %v2858_v12, %v1623_v40  ;;  %2878 = vmatmul.mubr.msk.f32.vlgmr.msra.gmra.mrb[16].mxu0 %vm124_vm2, %v2872_v9  ;;  %2885 = vmatmul.mubr.msk.f32.vlgmr.msra.gmra.mrb[16].mxu1 %vm124_vm2, %v2872_v9  ;;  %v1726_v1 = vpop.f32.mrb[13].mxu0  ;;  %v1849_v12 = vadd.f32 29.406033, %v4442_v28 }
 0x50d   :  { %v1735_v22 = vmul.f32 %v1726_v1, %v1622_v39  ;;  %3009 = vmatprep.subr.msk.bf16.mxu0 %vm3515_vm5, %v3007_v21  ;;  %2898 = vmatprep.mubr.msk.f32.mxu1 %vm124_vm2, %v1296_v0 }
 0x50e   :  { %v1741_v46 = vsel %vm1739_vm13, %v1736_v32, 0.0  ;;  %3012 = vmatpush3.bf16.xpose.msk.msra.mxu0 %vm3515_vm5, %v3007_v21  ;;  %1642 = vadd.xlane.f32.xlu1 %v1641_v23 }
 0x50f   :  { %v1740_v8 = vsel %vm1739_vm13, %v1735_v22, 0.0  ;;  %1627 = vadd.xlane.f32.xlu0 %v1626_v17  ;;  %v2865_v10 = vpop.f32.mrb[14].mxu0  ;;  %3022 = vmatprep.subr.bf16.mxu0 %v4253_v31  ;;  %v1845_v22 = vadd.f32 29.406033, %v4447_v4 }
 0x510   :  { %v1742_v45 = vadd.f32 %v1741_v46, %v1740_v8  ;;  %v1831_v6 = vmul.f32 %v2865_v10, %v2837_v42  ;;  %v1821_v19 = vpop.f32.mrb[15].mxu0 }
 0x511   :  { %v1830_v57 = vmul.f32 %v1821_v19, %v1453_v33 }
 0x512   :  { %v1835_v55 = vsel %vm1739_vm13, %v1831_v6, 0.0  ;;  %v1743_v37 = vrot.slane %v1742_v45, 4  ;;  %v2664_v6 = vld [vmem:[%s4376_s4 + $0x10] sm:$0xff] }
 0x513   :  { %v1834_v24 = vsel %vm1739_vm13, %v1830_v57, 0.0  ;;  %v1288_v57 = vsub.f32 0.0, %v4445_v49  ;;  %v1292_v49 = vsub.f32 0.0, %v4450_v13 }
 0x514   :  { %v1836_v63 = vadd.f32 %v1835_v55, %v1834_v24  ;;  %v1744_v39 = vadd.f32 %v1743_v37, %v1742_v45  ;;  %v2665_v45 = vld [vmem:[%s4376_s4 + $0x18] sm:$0xff]  ;;  %v1289_v37 = vsub.f32 0.0, %v4446_v5  ;;  %s3400_s4 = smov [#allocation3]  }
 0x515   :  { %s2533_s6 = sshll.u32 %s3400_s4, 4  ;;  %s2534_s6 = int_to_ptr.vmem [resolvable:$true] %s2533_s6 }
 0x516   :  { %v1837_v62 = vrot.slane %v1836_v63, 4  ;;  %v1745_v53 = vrot.slane %v1744_v39, 2  ;;  %s3223_s11 = scalar_lea.vmem %s2534_s6, 16  ;;  %s3227_s12 = scalar_lea.vmem %s2534_s6, 32 }
 0x517   :  { %p3224_p1 = scmp.ne.s32.totalorder %s2534_s6, %s3223_s11  ;;  %p3228_p2 = scmp.lt.s32.totalorder %s2534_s6, %s2534_s6 }
 0x518   :  { %v1838_v2 = vadd.f32 %v1837_v62, %v1836_v63  ;;  %v1746_v14 = vadd.f32 %v1745_v53, %v1744_v39  ;;  %p3229_p3 = scmp.lt.s32.totalorder %s3227_s12, %s3223_s11 }
 0x51a   :  { %v1839_v50 = vrot.slane %v1838_v2, 2  ;;  %v1747_v3 = vrot.slane %v1746_v14, 1  ;;  %p3230_p4 = por %p3229_p3, %p3228_p2 }
 0x51c   :  { %v1840_v41 = vadd.f32 %v1839_v50, %v1838_v2  ;;  %v1748_v32 = vadd.f32 %v1747_v3, %v1746_v14  ;;  %v1293_v2 = vsub.f32 0.0, %v4451_v54  ;;  %p3231_p5 = pnand %p3230_p4, %p3224_p1 }
 0x51e   :  { %v1841_v43 = vrot.slane %v1840_v41, 1 }
 0x520   :  { %v1842_v21 = vadd.f32 %v1841_v43, %v1840_v41 }
 0x597   :  { %v1646_v11 = vpop.xlane.xlu1 %1645  ;;  %v1631_v40 = vpop.xlane.xlu0 %1630 }
 0x59b   :  { %v1643_v42 = vpop.xlane.xlu1 %1642 }
 0x59c   :  { %v1647_v61 = vadd.f32 %v1646_v11, %v1643_v42  ;;  %v1628_v33 = vpop.xlane.xlu0 %1627 }
 0x59d   :  { %v1632_v59 = vadd.f32 %v1631_v40, %v1628_v33  ;;  %v1297_v40 = vsub.f32 0.0, %v4453_v30  ;;  %v4485_v30 = vld [vmem:[#allocation19_spill] sm:$0xff] }
 0x59e   :  { %v1648_v60 = vrot.slane %v1647_v61, 4 }
 0x59f   :  { %v1633_v38 = vrot.slane %v1632_v59, 4 }
 0x5a0   :  { %v1649_v36 = vadd.f32 %v1648_v60, %v1647_v61 }
 0x5a1   :  { %v1634_v51 = vadd.f32 %v1633_v38, %v1632_v59 }
 0x5a2   :  { %v1650_v16 = vrot.slane %v1649_v36, 2 }
 0x5a3   :  { %v1635_v52 = vrot.slane %v1634_v51, 2 }
 0x5a4   :  { %v1651_v18 = vadd.f32 %v1650_v16, %v1649_v36  ;;  %v2411_v16 = vmul.f32 %v1289_v37, %v4474_v26 }
 0x5a5   :  { %v1636_v27 = vadd.f32 %v1635_v52, %v1634_v51  ;;  %v2410_v52 = vmul.f32 %v1288_v57, %v3707_v56 }
 0x5a6   :  { %v1652_v9 = vrot.slane %v1651_v18, 1 }
 0x5a7   :  { %v1637_v47 = vrot.slane %v1636_v27, 1 }
 0x5a8   :  { %v1653_v15 = vadd.f32 %v1652_v9, %v1651_v18 }
 0x5a9   :  { %v1638_v44 = vadd.f32 %v1637_v47, %v1636_v27  ;;  %v2415_v47 = vsel %vm124_vm2, %v2411_v16, 0.0 }
 0x5aa   :  { %v1847_v7 = vsub.f32 0.0, %v1653_v15 }
 0x5ab   :  { %v1843_v1 = vsub.f32 0.0, %v1638_v44 }
 0x5ac   :  { %v1848_v23 = vsub.f32 %v1847_v7, %v1842_v21  ;;  %v2412_v21 = vsel %vm124_vm2, %v2410_v52, 0.0 }
 0x5ad   :  { %v1844_v46 = vsub.f32 %v1843_v1, %v1748_v32 }
 0x5ae   :  { %v1850_v17 = vsub.f32 %v1848_v23, %v1849_v12 }
 0x5af   :  { %v1846_v8 = vsub.f32 %v1844_v46, %v1845_v22 }
 0x5b1   :  { %v4314_v10 = vsub.f32 %v1846_v8, %v1850_v17 }
 0x5df   :  { %v2879_v19 = vpop.f32.mrb[16].mxu0  ;;  %v2886_v28 = vpop.f32.mrb[16].mxu1 }
 0x5e0   :  { %v2178_v55 = vsub.f32 %v2879_v19, %v2665_v45  ;;  %v2007_v4 = vpop.f32.mrb[17].mxu0  ;;  %v2082_v24 = vpop.f32.mrb[17].mxu1 }
 0x5e1   :  { %v2177_v63 = vsub.f32 %v2007_v4, %v2664_v6  ;;  %v3017_v62 = vpack.c.bf16 %v2879_v19, %v2007_v4  ;;  %2891 = vmatprep.mubr.msk.f32.mxu0 %vm124_vm2, %v2082_v24 }
 0x5e2   :  { %2892 = vmatmul.mubr.msk.f32.vlgmr.msra.gmra.mrb[18].mxu0 %vm124_vm2, %v2886_v28 }
 0x5e3   :  { %v3013_v11 = vpack.c.bf16 %v2178_v55, %v2177_v63  ;;  %3024 = vmatpush3.bf16.msra.mxu0 %v4253_v31  ;;  %2912 = vmatprep.mubr.msk.f32.mxu0 %vm124_vm2, %v1288_v57  ;;  %v4484_v31 = vld [vmem:[#allocation17_spill] sm:$0xff] }
 0x5e5   :  { %3014 = vmatprep.subr.bf16.mxu1 %v3013_v11 }
 0x5e6   :  { %3016 = vmatpush3.bf16.msra.mxu1 %v3013_v11  ;;  %2913 = vmatmul.mubr.msk.f32.vlgmr.msra.gmra.mrb[20].mxu0 %vm124_vm2, %v1289_v37 }
 0x5e7   :  { %3018 = vmatprep.subr.bf16.mxu1 %v3017_v62 }
 0x5e9   :  { %2899 = vmatmul.mubr.msk.f32.vlgmr.msra.gmra.mrb[18].mxu1 %vm124_vm2, %v1297_v40 }
 0x5ea   :  { %3020 = vmatpush3.bf16.msra.mxu1 %v3017_v62  ;;  %2905 = vmatprep.mubr.msk.f32.mxu1 %vm124_vm2, %v1292_v49 }
 0x5ed   :  { %2906 = vmatmul.mubr.msk.f32.vlgmr.msra.gmra.mrb[20].mxu1 %vm124_vm2, %v1293_v2 }
 0x6b5   :  { %v2893_v5 = vpop.f32.mrb[18].mxu0 }
 0x6b6   :  { %v2173_v39 = vadd.f32 %v2893_v5, %v4484_v31  ;;  %v2163_v42 = vpop.f32.mrb[19].mxu0 }
 0x6b7   :  { %v2172_v61 = vadd.f32 %v2163_v42, %v4485_v30 }
 0x6b8   :  { %v2180_v33 = vmul.f32 %v2173_v39, %v1297_v40  ;;  %v2195_v60 = vmul.f32 %v2173_v39, %v1293_v2 }
 0x6b9   :  { %v2179_v13 = vmul.f32 %v2172_v61, %v1296_v0  ;;  %v2914_v59 = vpop.f32.mrb[20].mxu0  ;;  %v2194_v36 = vmul.f32 %v2172_v61, %v1292_v49 }
 0x6ba   :  { %v2184_v50 = vsel %vm124_vm2, %v2180_v33, 0.0  ;;  %v2507_v54 = vmul.f32 %v2914_v59, %v4477_v20  ;;  %v2497_v53 = vpop.f32.mrb[21].mxu0  ;;  %v2199_v27 = vsel %vm124_vm2, %v2195_v60, 0.0 }
 0x6bb   :  { %2185 = vadd.xlane.f32.xlu1 %v2184_v50  ;;  %v2181_v38 = vsel %vm124_vm2, %v2179_v13, 0.0  ;;  %v2506_v51 = vmul.f32 %v2497_v53, %v4476_v34  ;;  %v2196_v34 = vsel %vm124_vm2, %v2194_v36, 0.0 }
 0x6bc   :  { %v2900_v41 = vpop.f32.mrb[18].mxu1  ;;  %2182 = vadd.xlane.f32.xlu0 %v2181_v38  ;;  %v2511_v35 = vsel %vm1739_vm13, %v2507_v54, 0.0 }
 0x6bd   :  { %v2291_v0 = vmul.f32 %v2900_v41, %v2178_v55  ;;  %v2281_v14 = vpop.f32.mrb[19].mxu1  ;;  %v2510_v18 = vsel %vm1739_vm13, %v2506_v51, 0.0 }
 0x6be   :  { %v2290_v20 = vmul.f32 %v2281_v14, %v2177_v63  ;;  %v2512_v43 = vadd.f32 %v2511_v35, %v2510_v18 }
 0x6bf   :  { %v2295_v9 = vsel %vm1739_vm13, %v2291_v0, 0.0  ;;  %2200 = vadd.xlane.f32.xlu1 %v2199_v27 }
 0x6c0   :  { %v2294_v3 = vsel %vm1739_vm13, %v2290_v20, 0.0  ;;  %v2907_v26 = vpop.f32.mrb[20].mxu1  ;;  %2197 = vadd.xlane.f32.xlu0 %v2196_v34  ;;  %v2513_v17 = vrot.slane %v2512_v43, 4  ;;  %v2399_v20 = vadd.f32 29.406033, %v4449_v25 }
 0x6c1   :  { %v2296_v15 = vadd.f32 %v2295_v9, %v2294_v3  ;;  %v2385_v44 = vmul.f32 %v2907_v26, %v2879_v19  ;;  %v2375_v56 = vpop.f32.mrb[21].mxu1  ;;  %v2403_v34 = vadd.f32 29.406033, %v4444_v29 }
 0x6c2   :  { %v2384_v7 = vmul.f32 %v2375_v56, %v2007_v4  ;;  %v2514_v55 = vadd.f32 %v2513_v17, %v2512_v43 }
 0x6c3   :  { %v2389_v12 = vsel %vm1739_vm13, %v2385_v44, 0.0  ;;  %2416 = vadd.xlane.f32.xlu1 %v2415_v47  ;;  %v2297_v22 = vrot.slane %v2296_v15, 4 }
 0x6c4   :  { %v2388_v32 = vsel %vm1739_vm13, %v2384_v7, 0.0  ;;  %2413 = vadd.xlane.f32.xlu0 %v2412_v21  ;;  %v2515_v2 = vrot.slane %v2514_v55, 2 }
 0x6c5   :  { %v2390_v1 = vadd.f32 %v2389_v12, %v2388_v32  ;;  %v2298_v45 = vadd.f32 %v2297_v22, %v2296_v15  ;;  %v1852_v12 = vmul.f32 0.5, %v4314_v10  ;;  %v2408_v22 = vld [vmem:[#allocation2] sm:$0x1] }
 0x6c6   :  { %v2516_v50 = vadd.f32 %v2515_v2, %v2514_v55 }
 0x6c7   :  { %v2391_v23 = vrot.slane %v2390_v1, 4  ;;  %v2299_v4 = vrot.slane %v2298_v45, 2 }
 0x6c8   :  { %v2517_v0 = vrot.slane %v2516_v50, 1 }
 0x6c9   :  { %v2392_v28 = vadd.f32 %v2391_v23, %v2390_v1  ;;  %v2300_v31 = vadd.f32 %v2299_v4, %v2298_v45 }
 0x6ca   :  { %v2518_v47 = vadd.f32 %v2517_v0, %v2516_v50 }
 0x6cb   :  { %v2393_v37 = vrot.slane %v2392_v28, 2  ;;  %v2301_v60 = vrot.slane %v2300_v31, 1 }
 0x6cd   :  { %v2394_v61 = vadd.f32 %v2393_v37, %v2392_v28  ;;  %v2302_v35 = vadd.f32 %v2301_v60, %v2300_v31 }
 0x6cf   :  { %v2395_v36 = vrot.slane %v2394_v61, 1 }
 0x6d1   :  { %v2396_v18 = vadd.f32 %v2395_v36, %v2394_v61 }
 0x748   :  { %v2186_v46 = vpop.xlane.xlu1 %2185 }
 0x749   :  { %v2183_v8 = vpop.xlane.xlu0 %2182 }
 0x74a   :  { %v2187_v6 = vadd.f32 %v2186_v46, %v2183_v8 }
 0x74c   :  { %v2188_v19 = vrot.slane %v2187_v6, 4  ;;  %v2201_v57 = vpop.xlane.xlu1 %2200 }
 0x74d   :  { %v2198_v24 = vpop.xlane.xlu0 %2197 }
 0x74e   :  { %v2189_v63 = vadd.f32 %v2188_v19, %v2187_v6  ;;  %v2202_v62 = vadd.f32 %v2201_v57, %v2198_v24 }
 0x750   :  { %v2190_v11 = vrot.slane %v2189_v63, 2  ;;  %v2203_v40 = vrot.slane %v2202_v62, 4  ;;  %v2417_v49 = vpop.xlane.xlu1 %2416 }
 0x751   :  { %v2414_v5 = vpop.xlane.xlu0 %2413 }
 0x752   :  { %v2191_v39 = vadd.f32 %v2190_v11, %v2189_v63  ;;  %v2204_v42 = vadd.f32 %v2203_v40, %v2202_v62  ;;  %v2418_v30 = vadd.f32 %v2417_v49, %v2414_v5 }
 0x754   :  { %v2192_v33 = vrot.slane %v2191_v39, 1  ;;  %v2205_v13 = vrot.slane %v2204_v42, 2  ;;  %v2419_v59 = vrot.slane %v2418_v30, 4 }
 0x756   :  { %v2193_v54 = vadd.f32 %v2192_v33, %v2191_v39  ;;  %v2206_v53 = vadd.f32 %v2205_v13, %v2204_v42  ;;  %v2420_v38 = vadd.f32 %v2419_v59, %v2418_v30 }
 0x758   :  { %v2397_v51 = vsub.f32 0.0, %v2193_v54  ;;  %v2207_v41 = vrot.slane %v2206_v53, 1  ;;  %v2421_v16 = vrot.slane %v2420_v38, 2 }
 0x75a   :  { %v2208_v14 = vadd.f32 %v2207_v41, %v2206_v53  ;;  %v2422_v52 = vadd.f32 %v2421_v16, %v2420_v38  ;;  %v2398_v27 = vsub.f32 %v2397_v51, %v2302_v35 }
 0x75c   :  { %v2401_v43 = vsub.f32 0.0, %v2208_v14  ;;  %v2423_v9 = vrot.slane %v2422_v52, 1  ;;  %v2400_v15 = vsub.f32 %v2398_v27, %v2399_v20 }
 0x75e   :  { %v2402_v3 = vsub.f32 %v2401_v43, %v2396_v18  ;;  %v2424_v26 = vadd.f32 %v2423_v9, %v2422_v52 }
 0x760   :  { %v2404_v44 = vsub.f32 %v2402_v3, %v2403_v34  ;;  %v2519_v56 = vadd.f32 %v2518_v47, %v2424_v26 }
 0x762   :  { %v2405_v21 = vsub.f32 %v2400_v15, %v2404_v44  ;;  %v2672_v7 = vadd.f32 -16.0, %v2519_v56 }
 0x764   :  { %v2406_v32 = vmul.f32 0.5, %v2405_v21  ;;  %v2521_v1 = vadd.f32 %v2672_v7, %v4441_v58 }
 0x766   :  { %v2407_v25 = vadd.f32 %v2406_v32, %v1852_v12  ;;  %v2522_v23 = vsub.f32 %v2521_v1, %v4440_v48 }
 0x768   :  { %v2409_v29 = vadd.f32 %v2408_v22, %v2407_v25  ;;  %v2523_v46 = vmul.f32 0.5, %v2522_v23 }
 0x76a   :  { %v2524_v17 = vsub.f32 %v2523_v46, %v2409_v29 }
 0x76c   :  { %2526 = vst.msk [vmem:[#allocation3] sm:$0x1] %vm2525_vm14, %v2524_v17 }
 0x76d   :  { %3234 = shalt.err (!%p3231_p5)
}
 0x76e   :  { %s3235_s14 = scalar_lea.hbm %s4379_s7, 16 }
 0x76f   :  { %p3236_p6 = scmp.ne.s32.totalorder %s4379_s7, %s3235_s14  ;;  %p3239_p7 = scmp.lt.u32.totalorder %s3235_s14, %s4379_s7 }
 0x771   :  { %p3241_p8 = pnand %p3239_p7, %p3236_p6 }
 0x773   :  { %3244 = shalt.err (!%p3241_p8)
}
 0x774   :  { %2536 = dma.vmem_to_hbm [thread:$0]  %s2534_s6, 16, %s4379_s7, [#allocation4]  }
 0x775   :  { %3321 = dma.done.wait [#allocation4], 16  }
 0x776   :  { %3322 = vsyncadd [#allocation4], 4294967280 }
 0x777   :  { %2540 = vsyncpa [#allocation4], 1 }

</bundles_post_ra>
